<compile_context>
chip_gen: v7x
topology: tpu7x:2x2x1
jax: 0.10.0
libtpu: 0.0.40
codegen_flags: <defaults>
</compile_context>

<pallas_src>
import jax
import jax.numpy as jnp
from jax import lax
from jax.experimental import pallas as pl
from jax.experimental.pallas import tpu as pltpu

CP = 128          # padded lane width for weights (MXU / vreg friendly)
EPS = 1e-5        # BatchNorm eps
NEG_SLOPE = 0.01  # F.leaky_relu default negative slope


# ----------------------------- Pallas kernel --------------------------------
def _make_kernel(has_proj):
    """Build the kernel body; `has_proj` selects projection vs identity shortcut."""

    def kernel(*refs):
        if has_proj:
            (x_ref, w1_ref, b1_ref, w2_ref, bias_ref, wsc_ref,
             o_ref, pad_ref, acc_ref) = refs
        else:
            (x_ref, w1_ref, b1_ref, w2_ref, bias_ref,
             o_ref, pad_ref, acc_ref) = refs

        _, H, W, Cin = x_ref.shape
        HW = H * W
        CPv = pad_ref.shape[-1]
        Cout = o_ref.shape[-1]

        x2d = x_ref[0].reshape(HW, Cin)                  # (H*W, Cin) pixels-as-rows

        # ---- conv1 (1x1, BN1 scale folded into w1) + bias + leaky_relu ------
        h = jnp.dot(x2d, w1_ref[...], preferred_element_type=jnp.float32)
        h = h + b1_ref[...]
        h = jnp.where(h > 0, h, NEG_SLOPE * h)

        # dy-padded activation scratch: zero only the two halo rows (cheap);
        # the interior is fully rewritten every grid step.
        pad_ref[0] = jnp.zeros((W, CPv), jnp.float32)
        pad_ref[H + 1] = jnp.zeros((W, CPv), jnp.float32)
        pad_ref[1:H + 1] = h.reshape(H, W, CPv)

        # ---- accumulator init: shortcut path + folded biases -----------------
        if has_proj:
            sc = jnp.dot(x2d, wsc_ref[...], preferred_element_type=jnp.float32)
            acc_ref[...] = sc + bias_ref[...]            # bias = bn2 + bn_sc biases
        else:
            acc_ref[...] = jnp.broadcast_to(bias_ref[...], (HW, CPv))

        # ---- conv2 (3x3, stride 1, pad 1) + bn2 (scale folded into w2) ------
        # dy taps: aligned leading-axis slices of pad_ref (no re-layout).
        # dx taps: sublane rotation (pltpu.roll) + row-boundary mask.
        col = lax.broadcasted_iota(jnp.int32, (HW, CPv), 0) % W
        has_left = col > 0                               # x-1 exists in this row
        has_right = col < (W - 1)                        # x+1 exists in this row
        for ky in range(3):
            slab = pad_ref[ky:ky + H].reshape(HW, CPv)   # rows y+ky-1 (f32)
            g_left = jnp.where(has_left,
                               pltpu.roll(slab, shift=1, axis=0), 0.0)
            g_right = jnp.where(has_right,
                                pltpu.roll(slab, shift=HW - 1, axis=0), 0.0)
            part = jnp.dot(g_left.astype(jnp.bfloat16), w2_ref[ky, 0],
                           preferred_element_type=jnp.float32)
            part = part + jnp.dot(slab.astype(jnp.bfloat16), w2_ref[ky, 1],
                                  preferred_element_type=jnp.float32)
            part = part + jnp.dot(g_right.astype(jnp.bfloat16), w2_ref[ky, 2],
                                  preferred_element_type=jnp.float32)
            acc_ref[...] += part

        # ---- residual add (identity case) + final leaky_relu ----------------
        out = acc_ref[...][:, :Cout]
        if not has_proj:
            out = out + x2d                              # identity shortcut (reuse x2d)
        out = jnp.where(out > 0, out, NEG_SLOPE * out)
        o_ref[0] = out.reshape(H, W, Cout)

    return kernel


# ----------------------------- parameter setup ------------------------------
def make_params(key, in_c, out_c):
    bott = out_c // 2  # expansion = 2
    ks = jax.random.split(key, 18)

    def u(k, shape, lo=-0.5, hi=0.5):
        return jax.random.uniform(k, shape, jnp.float32, lo, hi)

    def bn(k0, k1, k2, k3, c):
        return dict(gamma=u(k0, (c,), 0.5, 1.5), beta=u(k1, (c,)),
                    mean=u(k2, (c,)), var=u(k3, (c,), 0.5, 1.5))

    p = dict(
        w1=u(ks[0], (in_c, bott)), b1=u(ks[1], (bott,)),
        bn1=bn(ks[2], ks[3], ks[4], ks[5], bott),
        w2=u(ks[6], (3, 3, bott, out_c)), b2=u(ks[7], (out_c,)),   # HWIO
        bn2=bn(ks[8], ks[9], ks[10], ks[11], out_c),
    )
    if in_c != out_c:
        p['wsc'] = u(ks[12], (in_c, out_c))
        p['bsc'] = u(ks[13], (out_c,))
        p['bnsc'] = bn(ks[14], ks[15], ks[16], ks[17], out_c)
    return p


def _fold_bn(bnp, conv_bias):
    scale = bnp['gamma'] / jnp.sqrt(bnp['var'] + EPS)
    bias = bnp['beta'] + (conv_bias - bnp['mean']) * scale
    return scale, bias


# ----------------------------- wrapper ---------------------------------------
def residual_block_forward(x_nchw, params, in_c, out_c, stride=1):
    """NCHW in -> NCHW out (matches the PyTorch module)."""
    assert stride == 1, "only stride=1 supported (see TODO at top)"
    N, Cin, H, W = x_nchw.shape
    assert Cin == in_c
    assert W % 8 == 0, "W must be a multiple of 8 (sublane tiling)"

    bott = out_c // 2
    x_nhwc = jnp.transpose(x_nchw, (0, 2, 3, 1)).astype(jnp.float32)

    s1, b1 = _fold_bn(params['bn1'], params['b1'])
    s2, b2 = _fold_bn(params['bn2'], params['b2'])

    # BN scales folded into the conv weights' output columns; only the weights
    # are padded to 128 lanes (activations keep true channel width in HBM).
    w1p = jnp.zeros((in_c, CP), jnp.float32).at[:, :bott].set(
        params['w1'] * s1[None, :])
    b1p = jnp.zeros((1, CP), jnp.float32).at[0, :bott].set(b1)
    w2p = jnp.zeros((3, 3, CP, CP), jnp.float32).at[:, :, :bott, :out_c].set(
        params['w2'] * s2[None, None, None, :]).astype(jnp.bfloat16)

    has_proj = in_c != out_c
    if has_proj:
        ssc, bsc = _fold_bn(params['bnsc'], params['bsc'])
        wscp = jnp.zeros((in_c, CP), jnp.float32).at[:, :out_c].set(
            params['wsc'] * ssc[None, :])
        bias_tot = b2 + bsc
    else:
        bias_tot = b2
    biasp = jnp.zeros((1, CP), jnp.float32).at[0, :out_c].set(bias_tot)

    in_specs = [
        pl.BlockSpec((1, H, W, in_c), lambda n: (n, 0, 0, 0)),   # x, true width
        pl.BlockSpec((in_c, CP), lambda n: (0, 0)),              # w1 (scale folded)
        pl.BlockSpec((1, CP), lambda n: (0, 0)),                 # bn1 bias
        pl.BlockSpec((3, 3, CP, CP), lambda n: (0, 0, 0, 0)),    # w2, bf16
        pl.BlockSpec((1, CP), lambda n: (0, 0)),                 # bn2(+bnsc) bias
    ]
    args = [x_nhwc, w1p, b1p, w2p, biasp]
    if has_proj:
        in_specs.append(pl.BlockSpec((in_c, CP), lambda n: (0, 0)))   # wsc
        args.append(wscp)

    out_nhwc = pl.pallas_call(
        _make_kernel(has_proj),
        out_shape=jax.ShapeDtypeStruct((N, H, W, out_c), jnp.float32),
        grid_spec=pltpu.PrefetchScalarGridSpec(
            num_scalar_prefetch=0,
            grid=(N,),                                   # independent batch steps
            in_specs=in_specs,
            out_specs=pl.BlockSpec((1, H, W, out_c), lambda n: (n, 0, 0, 0)),
            scratch_shapes=[
                pltpu.VMEM((H + 2, W, CP), jnp.float32),  # dy-padded conv1 output
                pltpu.VMEM((H * W, CP), jnp.float32),     # f32 accumulator
            ]),
        compiler_params=pltpu.CompilerParams(
            dimension_semantics=("parallel",),           # v7x: shard batch on 2 TCs
            vmem_limit_bytes=32 * 1024 * 1024),
    )(*args)
    return jnp.transpose(out_nhwc, (0, 3, 1, 2))         # back to NCHW


# --------------------------- pure-JAX reference ------------------------------
def ref_forward(x_nchw, params, in_c, out_c):
    x = jnp.transpose(x_nchw, (0, 2, 3, 1)).astype(jnp.float32)  # NHWC
    dn = ('NHWC', 'HWIO', 'NHWC')

    def bn_apply(y, bnp, conv_bias):
        scale, bias = _fold_bn(bnp, conv_bias)
        return y * scale + bias

    h = lax.conv_general_dilated(x, params['w1'][None, None], (1, 1), 'VALID',
                                 dimension_numbers=dn)
    h = bn_apply(h, params['bn1'], params['b1'])
    h = jnp.where(h > 0, h, NEG_SLOPE * h)
    h = lax.conv_general_dilated(h, params['w2'], (1, 1), 'SAME',
                                 dimension_numbers=dn)
    h = bn_apply(h, params['bn2'], params['b2'])
    if in_c != out_c:
        s = lax.conv_general_dilated(x, params['wsc'][None, None], (1, 1),
                                     'VALID', dimension_numbers=dn)
        s = bn_apply(s, params['bnsc'], params['bsc'])
    else:
        s = x
    h = h + s
    h = jnp.where(h > 0, h, NEG_SLOPE * h)
    return jnp.transpose(h, (0, 3, 1, 2))               # NCHW


# --------------------------------- main --------------------------------------
if __name__ == "__main__":
    key = jax.random.PRNGKey(0)
    kx1, kp1, kx2, kp2 = jax.random.split(key, 4)
    N, H, W = 2, 16, 16

    # --- test 1: projection shortcut (in_c != out_c) ---
    in_c, out_c = 4, 8
    x = jax.random.normal(kx1, (N, in_c, H, W), jnp.float32)      # NCHW input
    params = make_params(kp1, in_c, out_c)
    out = jax.block_until_ready(
        residual_block_forward(x, params, in_c, out_c, stride=1))
    ref = ref_forward(x, params, in_c, out_c)
    assert out.shape == (N, out_c, H, W)
    # conv2 feeds the MXU bf16 operands -> loosened tolerance vs f32 reference.
    assert jnp.allclose(out, ref, rtol=5e-2, atol=5e-2), (
        f"proj shortcut: max abs err {jnp.max(jnp.abs(out - ref))}")

    # --- test 2: identity shortcut (in_c == out_c); shortcut matmul is skipped ---
    in_c2 = out_c2 = 8
    x2 = jax.random.normal(kx2, (N, in_c2, H, W), jnp.float32)
    params2 = make_params(kp2, in_c2, out_c2)
    out2 = jax.block_until_ready(
        residual_block_forward(x2, params2, in_c2, out_c2, stride=1))
    ref2 = ref_forward(x2, params2, in_c2, out_c2)
    assert out2.shape == (N, out_c2, H, W)
    assert jnp.allclose(out2, ref2, rtol=5e-2, atol=5e-2), (
        f"identity shortcut: max abs err {jnp.max(jnp.abs(out2 - ref2))}")

    print("KERNEL_OK")
</pallas_src>

<mosaic_0001>
module attributes {stable_mosaic.version = 11 : i64} {
  func.func @kernel(%arg0: i32, %arg1: memref<1x16x16x4xf32, #tpu.memory_space<vmem>>, %arg2: memref<4x128xf32, #tpu.memory_space<vmem>>, %arg3: memref<1x128xf32, #tpu.memory_space<vmem>>, %arg4: memref<3x3x128x128xbf16, #tpu.memory_space<vmem>>, %arg5: memref<1x128xf32, #tpu.memory_space<vmem>>, %arg6: memref<4x128xf32, #tpu.memory_space<vmem>>, %arg7: memref<1x16x16x8xf32, #tpu.memory_space<vmem>>, %arg8: memref<18x16x128xf32, #tpu.memory_space<vmem>>, %arg9: memref<256x128xf32, #tpu.memory_space<vmem>>) attributes {dimension_semantics = [#tpu.dimension_semantics<parallel>], iteration_bounds = array<i64: 2>, scalar_prefetch = 0 : i64, scratch_operands = 2 : i64, tpu.core_type = #tpu.core_type<tc>, window_params = [{transform_indices = @transform_0, window_bounds = array<i64: 1, 16, 16, 4>}, {pipeline_mode = #tpu.pipeline_mode<synchronous>, transform_indices = @transform_1, window_bounds = array<i64: 4, 128>}, {pipeline_mode = #tpu.pipeline_mode<synchronous>, transform_indices = @transform_2, window_bounds = array<i64: 1, 128>}, {pipeline_mode = #tpu.pipeline_mode<synchronous>, transform_indices = @transform_3, window_bounds = array<i64: 3, 3, 128, 128>}, {pipeline_mode = #tpu.pipeline_mode<synchronous>, transform_indices = @transform_4, window_bounds = array<i64: 1, 128>}, {pipeline_mode = #tpu.pipeline_mode<synchronous>, transform_indices = @transform_5, window_bounds = array<i64: 4, 128>}, {transform_indices = @transform_6, window_bounds = array<i64: 1, 16, 16, 8>}]} {
    %c0 = arith.constant 0 : index
    %c0_0 = arith.constant 0 : index
    %c0_1 = arith.constant 0 : index
    %c0_2 = arith.constant 0 : index
    %0 = vector.load %arg1[%c0, %c0_0, %c0_1, %c0_2] : memref<1x16x16x4xf32, #tpu.memory_space<vmem>>, vector<1x16x16x4xf32>
    %1 = vector.shape_cast %0 : vector<1x16x16x4xf32> to vector<16x16x4xf32>
    %2 = vector.shape_cast %1 : vector<16x16x4xf32> to vector<256x4xf32>
    %c0_3 = arith.constant 0 : index
    %c0_4 = arith.constant 0 : index
    %3 = vector.load %arg2[%c0_3, %c0_4] : memref<4x128xf32, #tpu.memory_space<vmem>>, vector<4x128xf32>
    %cst = arith.constant dense<0.000000e+00> : vector<256x128xf32>
    %4 = tpu.matmul %2, %3, %cst {dimension_numbers = #tpu.dot_dimension_numbers<[1], [0], [0], [1], [0, 0, 1, 1], [], []>} : vector<256x4xf32>, vector<4x128xf32>, vector<256x128xf32> -> vector<256x128xf32>
    %c0_5 = arith.constant 0 : index
    %c0_6 = arith.constant 0 : index
    %5 = vector.load %arg3[%c0_5, %c0_6] : memref<1x128xf32, #tpu.memory_space<vmem>>, vector<1x128xf32>
    %6 = vector.broadcast %5 : vector<1x128xf32> to vector<256x128xf32>
    %7 = arith.addf %4, %6 : vector<256x128xf32>
    %cst_7 = arith.constant 0.000000e+00 : f32
    %8 = vector.broadcast %cst_7 : f32 to vector<256x128xf32>
    %9 = arith.cmpf ogt, %7, %8 : vector<256x128xf32>
    %cst_8 = arith.constant 0.00999999977 : f32
    %10 = vector.broadcast %cst_8 : f32 to vector<256x128xf32>
    %11 = arith.mulf %10, %7 : vector<256x128xf32>
    %12 = arith.select %9, %7, %11 : vector<256x128xi1>, vector<256x128xf32>
    %cst_9 = arith.constant 0.000000e+00 : f32
    %13 = vector.broadcast %cst_9 : f32 to vector<16x128xf32>
    %c0_10 = arith.constant 0 : index
    %c0_11 = arith.constant 0 : index
    %c0_12 = arith.constant 0 : index
    %14 = vector.load %arg8[%c0_10, %c0_11, %c0_12] : memref<18x16x128xf32, #tpu.memory_space<vmem>>, vector<1x16x128xf32>
    %15 = vector.shape_cast %14 : vector<1x16x128xf32> to vector<16x128xf32>
    %16 = vector.shape_cast %13 : vector<16x128xf32> to vector<1x16x128xf32>
    tpu.vector_store %arg8[%c0_10, %c0_11, %c0_12], %16 {strides = array<i32>} : memref<18x16x128xf32, #tpu.memory_space<vmem>>, vector<1x16x128xf32>,
    %cst_13 = arith.constant 0.000000e+00 : f32
    %17 = vector.broadcast %cst_13 : f32 to vector<16x128xf32>
    %c17 = arith.constant 17 : index
    %c0_14 = arith.constant 0 : index
    %c0_15 = arith.constant 0 : index
    %18 = vector.load %arg8[%c17, %c0_14, %c0_15] : memref<18x16x128xf32, #tpu.memory_space<vmem>>, vector<1x16x128xf32>
    %19 = vector.shape_cast %18 : vector<1x16x128xf32> to vector<16x128xf32>
    %20 = vector.shape_cast %17 : vector<16x128xf32> to vector<1x16x128xf32>
    tpu.vector_store %arg8[%c17, %c0_14, %c0_15], %20 {strides = array<i32>} : memref<18x16x128xf32, #tpu.memory_space<vmem>>, vector<1x16x128xf32>,
    %21 = vector.shape_cast %12 : vector<256x128xf32> to vector<16x16x128xf32>
    %c1 = arith.constant 1 : index
    %c0_16 = arith.constant 0 : index
    %c0_17 = arith.constant 0 : index
    %22 = vector.load %arg8[%c1, %c0_16, %c0_17] : memref<18x16x128xf32, #tpu.memory_space<vmem>>, vector<16x16x128xf32>
    tpu.vector_store %arg8[%c1, %c0_16, %c0_17], %21 {strides = array<i32>} : memref<18x16x128xf32, #tpu.memory_space<vmem>>, vector<16x16x128xf32>,
    %c0_18 = arith.constant 0 : index
    %c0_19 = arith.constant 0 : index
    %23 = vector.load %arg6[%c0_18, %c0_19] : memref<4x128xf32, #tpu.memory_space<vmem>>, vector<4x128xf32>
    %cst_20 = arith.constant dense<0.000000e+00> : vector<256x128xf32>
    %24 = tpu.matmul %2, %23, %cst_20 {dimension_numbers = #tpu.dot_dimension_numbers<[1], [0], [0], [1], [0, 0, 1, 1], [], []>} : vector<256x4xf32>, vector<4x128xf32>, vector<256x128xf32> -> vector<256x128xf32>
    %c0_21 = arith.constant 0 : index
    %c0_22 = arith.constant 0 : index
    %25 = vector.load %arg5[%c0_21, %c0_22] : memref<1x128xf32, #tpu.memory_space<vmem>>, vector<1x128xf32>
    %26 = vector.broadcast %25 : vector<1x128xf32> to vector<256x128xf32>
    %27 = arith.addf %24, %26 : vector<256x128xf32>
    %c0_23 = arith.constant 0 : index
    %c0_24 = arith.constant 0 : index
    %28 = vector.load %arg9[%c0_23, %c0_24] : memref<256x128xf32, #tpu.memory_space<vmem>>, vector<256x128xf32>
    tpu.vector_store %arg9[%c0_23, %c0_24], %27 {strides = array<i32>} : memref<256x128xf32, #tpu.memory_space<vmem>>, vector<256x128xf32>,
    %29 = tpu.iota {dimensions = array<i32: 0>} : vector<256x128xi32>
    %c16_i32 = arith.constant 16 : i32
    %c0_i32 = arith.constant 0 : i32
    %30 = arith.cmpi eq, %c16_i32, %c0_i32 : i32
    %c1_i32 = arith.constant 1 : i32
    %31 = arith.select %30, %c1_i32, %c16_i32 : i32
    %32 = vector.broadcast %31 : i32 to vector<256x128xi32>
    %33 = arith.remsi %29, %32 : vector<256x128xi32>
    %c0_i32_25 = arith.constant 0 : i32
    %34 = vector.broadcast %c0_i32_25 : i32 to vector<256x128xi32>
    %35 = arith.cmpi ne, %33, %34 : vector<256x128xi32>
    %c0_i32_26 = arith.constant 0 : i32
    %36 = vector.broadcast %c0_i32_26 : i32 to vector<256x128xi32>
    %37 = arith.cmpi slt, %33, %36 : vector<256x128xi32>
    %c0_i32_27 = arith.constant 0 : i32
    %38 = arith.cmpi slt, %31, %c0_i32_27 : i32
    %39 = vector.broadcast %38 : i1 to vector<256x128xi1>
    %40 = vector.broadcast %39 : vector<256x128xi1> to vector<256x128xi1>
    %41 = arith.xori %37, %40 : vector<256x128xi1>
    %42 = arith.andi %41, %35 : vector<256x128xi1>
    %43 = vector.broadcast %31 : i32 to vector<256x128xi32>
    %44 = arith.addi %33, %43 : vector<256x128xi32>
    %45 = arith.select %42, %44, %33 : vector<256x128xi1>, vector<256x128xi32>
    %c0_i32_28 = arith.constant 0 : i32
    %46 = vector.broadcast %c0_i32_28 : i32 to vector<256x128xi32>
    %47 = arith.cmpi sgt, %45, %46 : vector<256x128xi32>
    %c15_i32 = arith.constant 15 : i32
    %48 = vector.broadcast %c15_i32 : i32 to vector<256x128xi32>
    %49 = arith.cmpi slt, %45, %48 : vector<256x128xi32>
    %c0_29 = arith.constant 0 : index
    %c0_30 = arith.constant 0 : index
    %c0_31 = arith.constant 0 : index
    %50 = vector.load %arg8[%c0_29, %c0_30, %c0_31] : memref<18x16x128xf32, #tpu.memory_space<vmem>>, vector<16x16x128xf32>
    %51 = vector.shape_cast %50 : vector<16x16x128xf32> to vector<256x128xf32>
    %c1_i32_32 = arith.constant 1 : i32
    %52 = tpu.dynamic_rotate %51 by %c1_i32_32 dim 0 : vector<256x128xf32>, i32 -> vector<256x128xf32>
    %cst_33 = arith.constant 0.000000e+00 : f32
    %53 = vector.broadcast %cst_33 : f32 to vector<256x128xf32>
    %54 = arith.select %47, %52, %53 : vector<256x128xi1>, vector<256x128xf32>
    %c255_i32 = arith.constant 255 : i32
    %55 = tpu.dynamic_rotate %51 by %c255_i32 dim 0 : vector<256x128xf32>, i32 -> vector<256x128xf32>
    %cst_34 = arith.constant 0.000000e+00 : f32
    %56 = vector.broadcast %cst_34 : f32 to vector<256x128xf32>
    %57 = arith.select %49, %55, %56 : vector<256x128xi1>, vector<256x128xf32>
    %58 = arith.truncf %54 : vector<256x128xf32> to vector<256x128xbf16>
    %c0_35 = arith.constant 0 : index
    %c0_36 = arith.constant 0 : index
    %c0_37 = arith.constant 0 : index
    %c0_38 = arith.constant 0 : index
    %59 = vector.load %arg4[%c0_35, %c0_36, %c0_37, %c0_38] : memref<3x3x128x128xbf16, #tpu.memory_space<vmem>>, vector<1x1x128x128xbf16>
    %60 = vector.shape_cast %59 : vector<1x1x128x128xbf16> to vector<128x128xbf16>
    %cst_39 = arith.constant dense<0.000000e+00> : vector<256x128xf32>
    %61 = tpu.matmul %58, %60, %cst_39 {dimension_numbers = #tpu.dot_dimension_numbers<[1], [0], [0], [1], [0, 0, 1, 1], [], []>} : vector<256x128xbf16>, vector<128x128xbf16>, vector<256x128xf32> -> vector<256x128xf32>
    %62 = arith.truncf %51 : vector<256x128xf32> to vector<256x128xbf16>
    %c0_40 = arith.constant 0 : index
    %c1_41 = arith.constant 1 : index
    %c0_42 = arith.constant 0 : index
    %c0_43 = arith.constant 0 : index
    %63 = vector.load %arg4[%c0_40, %c1_41, %c0_42, %c0_43] : memref<3x3x128x128xbf16, #tpu.memory_space<vmem>>, vector<1x1x128x128xbf16>
    %64 = vector.shape_cast %63 : vector<1x1x128x128xbf16> to vector<128x128xbf16>
    %cst_44 = arith.constant dense<0.000000e+00> : vector<256x128xf32>
    %65 = tpu.matmul %62, %64, %cst_44 {dimension_numbers = #tpu.dot_dimension_numbers<[1], [0], [0], [1], [0, 0, 1, 1], [], []>} : vector<256x128xbf16>, vector<128x128xbf16>, vector<256x128xf32> -> vector<256x128xf32>
    %66 = arith.addf %61, %65 : vector<256x128xf32>
    %67 = arith.truncf %57 : vector<256x128xf32> to vector<256x128xbf16>
    %c0_45 = arith.constant 0 : index
    %c2 = arith.constant 2 : index
    %c0_46 = arith.constant 0 : index
    %c0_47 = arith.constant 0 : index
    %68 = vector.load %arg4[%c0_45, %c2, %c0_46, %c0_47] : memref<3x3x128x128xbf16, #tpu.memory_space<vmem>>, vector<1x1x128x128xbf16>
    %69 = vector.shape_cast %68 : vector<1x1x128x128xbf16> to vector<128x128xbf16>
    %cst_48 = arith.constant dense<0.000000e+00> : vector<256x128xf32>
    %70 = tpu.matmul %67, %69, %cst_48 {dimension_numbers = #tpu.dot_dimension_numbers<[1], [0], [0], [1], [0, 0, 1, 1], [], []>} : vector<256x128xbf16>, vector<128x128xbf16>, vector<256x128xf32> -> vector<256x128xf32>
    %71 = arith.addf %66, %70 : vector<256x128xf32>
    %c0_49 = arith.constant 0 : index
    %c0_50 = arith.constant 0 : index
    %72 = vector.load %arg9[%c0_49, %c0_50] : memref<256x128xf32, #tpu.memory_space<vmem>>, vector<256x128xf32>
    %73 = arith.addf %72, %71 : vector<256x128xf32>
    %c0_51 = arith.constant 0 : index
    %c0_52 = arith.constant 0 : index
    %74 = vector.load %arg9[%c0_51, %c0_52] : memref<256x128xf32, #tpu.memory_space<vmem>>, vector<256x128xf32>
    tpu.vector_store %arg9[%c0_51, %c0_52], %73 {strides = array<i32>} : memref<256x128xf32, #tpu.memory_space<vmem>>, vector<256x128xf32>,
    %c1_53 = arith.constant 1 : index
    %c0_54 = arith.constant 0 : index
    %c0_55 = arith.constant 0 : index
    %75 = vector.load %arg8[%c1_53, %c0_54, %c0_55] : memref<18x16x128xf32, #tpu.memory_space<vmem>>, vector<16x16x128xf32>
    %76 = vector.shape_cast %75 : vector<16x16x128xf32> to vector<256x128xf32>
    %c1_i32_56 = arith.constant 1 : i32
    %77 = tpu.dynamic_rotate %76 by %c1_i32_56 dim 0 : vector<256x128xf32>, i32 -> vector<256x128xf32>
    %cst_57 = arith.constant 0.000000e+00 : f32
    %78 = vector.broadcast %cst_57 : f32 to vector<256x128xf32>
    %79 = arith.select %47, %77, %78 : vector<256x128xi1>, vector<256x128xf32>
    %c255_i32_58 = arith.constant 255 : i32
    %80 = tpu.dynamic_rotate %76 by %c255_i32_58 dim 0 : vector<256x128xf32>, i32 -> vector<256x128xf32>
    %cst_59 = arith.constant 0.000000e+00 : f32
    %81 = vector.broadcast %cst_59 : f32 to vector<256x128xf32>
    %82 = arith.select %49, %80, %81 : vector<256x128xi1>, vector<256x128xf32>
    %83 = arith.truncf %79 : vector<256x128xf32> to vector<256x128xbf16>
    %c1_60 = arith.constant 1 : index
    %c0_61 = arith.constant 0 : index
    %c0_62 = arith.constant 0 : index
    %c0_63 = arith.constant 0 : index
    %84 = vector.load %arg4[%c1_60, %c0_61, %c0_62, %c0_63] : memref<3x3x128x128xbf16, #tpu.memory_space<vmem>>, vector<1x1x128x128xbf16>
    %85 = vector.shape_cast %84 : vector<1x1x128x128xbf16> to vector<128x128xbf16>
    %cst_64 = arith.constant dense<0.000000e+00> : vector<256x128xf32>
    %86 = tpu.matmul %83, %85, %cst_64 {dimension_numbers = #tpu.dot_dimension_numbers<[1], [0], [0], [1], [0, 0, 1, 1], [], []>} : vector<256x128xbf16>, vector<128x128xbf16>, vector<256x128xf32> -> vector<256x128xf32>
    %87 = arith.truncf %76 : vector<256x128xf32> to vector<256x128xbf16>
    %c1_65 = arith.constant 1 : index
    %c1_66 = arith.constant 1 : index
    %c0_67 = arith.constant 0 : index
    %c0_68 = arith.constant 0 : index
    %88 = vector.load %arg4[%c1_65, %c1_66, %c0_67, %c0_68] : memref<3x3x128x128xbf16, #tpu.memory_space<vmem>>, vector<1x1x128x128xbf16>
    %89 = vector.shape_cast %88 : vector<1x1x128x128xbf16> to vector<128x128xbf16>
    %cst_69 = arith.constant dense<0.000000e+00> : vector<256x128xf32>
    %90 = tpu.matmul %87, %89, %cst_69 {dimension_numbers = #tpu.dot_dimension_numbers<[1], [0], [0], [1], [0, 0, 1, 1], [], []>} : vector<256x128xbf16>, vector<128x128xbf16>, vector<256x128xf32> -> vector<256x128xf32>
    %91 = arith.addf %86, %90 : vector<256x128xf32>
    %92 = arith.truncf %82 : vector<256x128xf32> to vector<256x128xbf16>
    %c1_70 = arith.constant 1 : index
    %c2_71 = arith.constant 2 : index
    %c0_72 = arith.constant 0 : index
    %c0_73 = arith.constant 0 : index
    %93 = vector.load %arg4[%c1_70, %c2_71, %c0_72, %c0_73] : memref<3x3x128x128xbf16, #tpu.memory_space<vmem>>, vector<1x1x128x128xbf16>
    %94 = vector.shape_cast %93 : vector<1x1x128x128xbf16> to vector<128x128xbf16>
    %cst_74 = arith.constant dense<0.000000e+00> : vector<256x128xf32>
    %95 = tpu.matmul %92, %94, %cst_74 {dimension_numbers = #tpu.dot_dimension_numbers<[1], [0], [0], [1], [0, 0, 1, 1], [], []>} : vector<256x128xbf16>, vector<128x128xbf16>, vector<256x128xf32> -> vector<256x128xf32>
    %96 = arith.addf %91, %95 : vector<256x128xf32>
    %c0_75 = arith.constant 0 : index
    %c0_76 = arith.constant 0 : index
    %97 = vector.load %arg9[%c0_75, %c0_76] : memref<256x128xf32, #tpu.memory_space<vmem>>, vector<256x128xf32>
    %98 = arith.addf %97, %96 : vector<256x128xf32>
    %c0_77 = arith.constant 0 : index
    %c0_78 = arith.constant 0 : index
    %99 = vector.load %arg9[%c0_77, %c0_78] : memref<256x128xf32, #tpu.memory_space<vmem>>, vector<256x128xf32>
    tpu.vector_store %arg9[%c0_77, %c0_78], %98 {strides = array<i32>} : memref<256x128xf32, #tpu.memory_space<vmem>>, vector<256x128xf32>,
    %c2_79 = arith.constant 2 : index
    %c0_80 = arith.constant 0 : index
    %c0_81 = arith.constant 0 : index
    %100 = vector.load %arg8[%c2_79, %c0_80, %c0_81] : memref<18x16x128xf32, #tpu.memory_space<vmem>>, vector<16x16x128xf32>
    %101 = vector.shape_cast %100 : vector<16x16x128xf32> to vector<256x128xf32>
    %c1_i32_82 = arith.constant 1 : i32
    %102 = tpu.dynamic_rotate %101 by %c1_i32_82 dim 0 : vector<256x128xf32>, i32 -> vector<256x128xf32>
    %cst_83 = arith.constant 0.000000e+00 : f32
    %103 = vector.broadcast %cst_83 : f32 to vector<256x128xf32>
    %104 = arith.select %47, %102, %103 : vector<256x128xi1>, vector<256x128xf32>
    %c255_i32_84 = arith.constant 255 : i32
    %105 = tpu.dynamic_rotate %101 by %c255_i32_84 dim 0 : vector<256x128xf32>, i32 -> vector<256x128xf32>
    %cst_85 = arith.constant 0.000000e+00 : f32
    %106 = vector.broadcast %cst_85 : f32 to vector<256x128xf32>
    %107 = arith.select %49, %105, %106 : vector<256x128xi1>, vector<256x128xf32>
    %108 = arith.truncf %104 : vector<256x128xf32> to vector<256x128xbf16>
    %c2_86 = arith.constant 2 : index
    %c0_87 = arith.constant 0 : index
    %c0_88 = arith.constant 0 : index
    %c0_89 = arith.constant 0 : index
    %109 = vector.load %arg4[%c2_86, %c0_87, %c0_88, %c0_89] : memref<3x3x128x128xbf16, #tpu.memory_space<vmem>>, vector<1x1x128x128xbf16>
    %110 = vector.shape_cast %109 : vector<1x1x128x128xbf16> to vector<128x128xbf16>
    %cst_90 = arith.constant dense<0.000000e+00> : vector<256x128xf32>
    %111 = tpu.matmul %108, %110, %cst_90 {dimension_numbers = #tpu.dot_dimension_numbers<[1], [0], [0], [1], [0, 0, 1, 1], [], []>} : vector<256x128xbf16>, vector<128x128xbf16>, vector<256x128xf32> -> vector<256x128xf32>
    %112 = arith.truncf %101 : vector<256x128xf32> to vector<256x128xbf16>
    %c2_91 = arith.constant 2 : index
    %c1_92 = arith.constant 1 : index
    %c0_93 = arith.constant 0 : index
    %c0_94 = arith.constant 0 : index
    %113 = vector.load %arg4[%c2_91, %c1_92, %c0_93, %c0_94] : memref<3x3x128x128xbf16, #tpu.memory_space<vmem>>, vector<1x1x128x128xbf16>
    %114 = vector.shape_cast %113 : vector<1x1x128x128xbf16> to vector<128x128xbf16>
    %cst_95 = arith.constant dense<0.000000e+00> : vector<256x128xf32>
    %115 = tpu.matmul %112, %114, %cst_95 {dimension_numbers = #tpu.dot_dimension_numbers<[1], [0], [0], [1], [0, 0, 1, 1], [], []>} : vector<256x128xbf16>, vector<128x128xbf16>, vector<256x128xf32> -> vector<256x128xf32>
    %116 = arith.addf %111, %115 : vector<256x128xf32>
    %117 = arith.truncf %107 : vector<256x128xf32> to vector<256x128xbf16>
    %c2_96 = arith.constant 2 : index
    %c2_97 = arith.constant 2 : index
    %c0_98 = arith.constant 0 : index
    %c0_99 = arith.constant 0 : index
    %118 = vector.load %arg4[%c2_96, %c2_97, %c0_98, %c0_99] : memref<3x3x128x128xbf16, #tpu.memory_space<vmem>>, vector<1x1x128x128xbf16>
    %119 = vector.shape_cast %118 : vector<1x1x128x128xbf16> to vector<128x128xbf16>
    %cst_100 = arith.constant dense<0.000000e+00> : vector<256x128xf32>
    %120 = tpu.matmul %117, %119, %cst_100 {dimension_numbers = #tpu.dot_dimension_numbers<[1], [0], [0], [1], [0, 0, 1, 1], [], []>} : vector<256x128xbf16>, vector<128x128xbf16>, vector<256x128xf32> -> vector<256x128xf32>
    %121 = arith.addf %116, %120 : vector<256x128xf32>
    %c0_101 = arith.constant 0 : index
    %c0_102 = arith.constant 0 : index
    %122 = vector.load %arg9[%c0_101, %c0_102] : memref<256x128xf32, #tpu.memory_space<vmem>>, vector<256x128xf32>
    %123 = arith.addf %122, %121 : vector<256x128xf32>
    %c0_103 = arith.constant 0 : index
    %c0_104 = arith.constant 0 : index
    %124 = vector.load %arg9[%c0_103, %c0_104] : memref<256x128xf32, #tpu.memory_space<vmem>>, vector<256x128xf32>
    tpu.vector_store %arg9[%c0_103, %c0_104], %123 {strides = array<i32>} : memref<256x128xf32, #tpu.memory_space<vmem>>, vector<256x128xf32>,
    %c0_105 = arith.constant 0 : index
    %c0_106 = arith.constant 0 : index
    %125 = vector.load %arg9[%c0_105, %c0_106] : memref<256x128xf32, #tpu.memory_space<vmem>>, vector<256x128xf32>
    %126 = vector.extract_strided_slice %125 {offsets = [0, 0], sizes = [256, 8], strides = [1, 1]} : vector<256x128xf32> to vector<256x8xf32>
    %cst_107 = arith.constant 0.000000e+00 : f32
    %127 = vector.broadcast %cst_107 : f32 to vector<256x8xf32>
    %128 = arith.cmpf ogt, %126, %127 : vector<256x8xf32>
    %cst_108 = arith.constant 0.00999999977 : f32
    %129 = vector.broadcast %cst_108 : f32 to vector<256x8xf32>
    %130 = arith.mulf %129, %126 : vector<256x8xf32>
    %131 = arith.select %128, %126, %130 : vector<256x8xi1>, vector<256x8xf32>
    %132 = vector.shape_cast %131 : vector<256x8xf32> to vector<16x16x8xf32>
    %c0_109 = arith.constant 0 : index
    %c0_110 = arith.constant 0 : index
    %c0_111 = arith.constant 0 : index
    %c0_112 = arith.constant 0 : index
    %133 = vector.load %arg7[%c0_109, %c0_110, %c0_111, %c0_112] : memref<1x16x16x8xf32, #tpu.memory_space<vmem>>, vector<1x16x16x8xf32>
    %134 = vector.shape_cast %133 : vector<1x16x16x8xf32> to vector<16x16x8xf32>
    %135 = vector.shape_cast %132 : vector<16x16x8xf32> to vector<1x16x16x8xf32>
    tpu.vector_store %arg7[%c0_109, %c0_110, %c0_111, %c0_112], %135 {strides = array<i32>} : memref<1x16x16x8xf32, #tpu.memory_space<vmem>>, vector<1x16x16x8xf32>,
    return
  }
  func.func @transform_0(%arg0: i32) -> (i32, i32, i32, i32) {
    %c0_i32 = arith.constant 0 : i32
    %c0_i32_0 = arith.constant 0 : i32
    %c0_i32_1 = arith.constant 0 : i32
    %c0_i32_2 = arith.constant 0 : i32
    return %arg0, %c0_i32, %c0_i32_0, %c0_i32_1 : i32, i32, i32, i32
  }
  func.func @transform_1(%arg0: i32) -> (i32, i32) {
    %c0_i32 = arith.constant 0 : i32
    %c0_i32_0 = arith.constant 0 : i32
    %c0_i32_1 = arith.constant 0 : i32
    return %c0_i32, %c0_i32_0 : i32, i32
  }
  func.func @transform_2(%arg0: i32) -> (i32, i32) {
    %c0_i32 = arith.constant 0 : i32
    %c0_i32_0 = arith.constant 0 : i32
    %c0_i32_1 = arith.constant 0 : i32
    return %c0_i32, %c0_i32_0 : i32, i32
  }
  func.func @transform_3(%arg0: i32) -> (i32, i32, i32, i32) {
    %c0_i32 = arith.constant 0 : i32
    %c0_i32_0 = arith.constant 0 : i32
    %c0_i32_1 = arith.constant 0 : i32
    %c0_i32_2 = arith.constant 0 : i32
    %c0_i32_3 = arith.constant 0 : i32
    return %c0_i32, %c0_i32_0, %c0_i32_1, %c0_i32_2 : i32, i32, i32, i32
  }
  func.func @transform_4(%arg0: i32) -> (i32, i32) {
    %c0_i32 = arith.constant 0 : i32
    %c0_i32_0 = arith.constant 0 : i32
    %c0_i32_1 = arith.constant 0 : i32
    return %c0_i32, %c0_i32_0 : i32, i32
  }
  func.func @transform_5(%arg0: i32) -> (i32, i32) {
    %c0_i32 = arith.constant 0 : i32
    %c0_i32_0 = arith.constant 0 : i32
    %c0_i32_1 = arith.constant 0 : i32
    return %c0_i32, %c0_i32_0 : i32, i32
  }
  func.func @transform_6(%arg0: i32) -> (i32, i32, i32, i32) {
    %c0_i32 = arith.constant 0 : i32
    %c0_i32_0 = arith.constant 0 : i32
    %c0_i32_1 = arith.constant 0 : i32
    %c0_i32_2 = arith.constant 0 : i32
    return %arg0, %c0_i32, %c0_i32_0, %c0_i32_1 : i32, i32, i32, i32
  }
}

</mosaic_0001>

<bundles_post_ra>
// kernel: tpu_custom_call.1
= control target key start
LH: loop header
LB: loop body
LE: loop exit
PB: predicated region body
PF: predicated region fallthrough
CT: control target
= control target key end

     0   :  { %s6724_s21 = smov 0   ;;  %s8704_s0 = inlined_call_operand.vmem [shape: f32[2,16,16,4], index: 0, kind: input, shape index: {}]   ;;  %s8705_s1 = inlined_call_operand.vmem [shape: f32[4,128], index: 1, kind: input, shape index: {}]   ;;  %s8706_s2 = inlined_call_operand.vmem [shape: f32[1,128], index: 2, kind: input, shape index: {}]   ;;  %s8707_s3 = inlined_call_operand.vmem [shape: bf16[3,3,128,128], index: 3, kind: input, shape index: {}]   ;;  %s8708_s4 = inlined_call_operand.vmem [shape: f32[1,128], index: 4, kind: input, shape index: {}]   ;;  %s8709_s5 = inlined_call_operand.vmem [shape: f32[4,128], index: 5, kind: input, shape index: {}]   ;;  %s8710_s6 = inlined_call_operand.vmem [shape: f32[2,16,16,8], index: 6, kind: output, shape index: {}]  }
   0x1 LB: > { %s4954_s22 = sadd.s32 4294967295, %s6684_s21   ;;  %p4958_p0 = scmp.ge.s32.totalorder %s6684_s21, 1  ;;  %s6684_s21 = sphi %s6724_s21, %s16_s21  }
   0x2   : > { %p212_p1 = scmp.lt.s32.totalorder %s6684_s21, 3 }
   0x4   : > { %p213_p2 = pnand %p4958_p0, %p212_p1 }
   0x6   : > { %216 = sbr.rel (%p213_p2) target bundleno = 838 (0x346), region = 44 }
   0xd   : > { %v285_v0 = vld [vmem:[%s8705_s1] sm:$0xf]  ;;  %vm390_vm0 = vcmask 1043456   ;;  %p242_p3 = scmp.lt.s32.totalorder %s4954_s22, 1  ;;  %vm293_vm1 = vcmask 31744   ;;  %v6607_v35 = vld [vmem:[%s8707_s3 + $0x48] sm:$0xff]   ;;  %v1021_v54 = vlaneseq }
   0xe   : > { %5805 = vmatprep.subr.msk.mxu0 %vm390_vm0, %v285_v0  ;;  %v753_v1 = vld [vmem:[%s8709_s5] sm:$0xf]  ;;  %v6608_v36 = vld [vmem:[%s8707_s3 + $0x50] sm:$0xff]   ;;  %v6609_v37 = vld [vmem:[%s8707_s3 + $0x58] sm:$0xff]   ;;  %v8711_v42 = vmov 0.0|0.0  }
   0xf   : > { %5806 = vmatpush3.msk.msra.mxu0 %vm390_vm0, %v285_v0  ;;  %s9076_s22 = smov (!%p242_p3, %s4954_s22), 1  ;;  %6337 = vmatprep.subr.msk.mxu1 %vm390_vm0, %v753_v1  ;;  %v6756_v2 = vld [vmem:[%s8707_s3 + $0x40] sm:$0xff]   ;;  %v6611_v39 = vld [vmem:[%s8707_s3 + $0x68] sm:$0xff]   ;;  %v6612_v40 = vld [vmem:[%s8707_s3 + $0x70] sm:$0xff]   ;;  %v6986_v59 = vshrl.u32 %v1021_v54, 7 }
  0x10   : > { %5855 = vmatprep.subr.msk.mxu0 %vm390_vm0, %v753_v1  ;;  %6338 = vmatpush3.msk.msra.mxu1 %vm390_vm0, %v753_v1  ;;  %s5521_s27 = sshll.u32 %s9076_s22, 8  ;;  %v6610_v38 = vld [vmem:[%s8707_s3 + $0x60] sm:$0xff]   ;;  %v6613_v41 = vld [vmem:[%s8707_s3 + $0x78] sm:$0xff]   ;;  %v6616_v45 = vld [vmem:[%s8707_s3 + $0xc8] sm:$0xff]  }
  0x11   : > { %s6751_s30 = scalar_lea.vmem %s8704_s0, %s5521_s27  ;;  %v6614_v43 = vld [vmem:[%s8707_s3 + $0xc0] sm:$0xff]   ;;  %v6618_v46 = vld [vmem:[%s8707_s3 + $0xd0] sm:$0xff]   ;;  %v6620_v47 = vld [vmem:[%s8707_s3 + $0xd8] sm:$0xff]   ;;  %vm8759_vm4 = vcmp.lt.s32.totalorder %v6986_v59, 1  ;;  %vm8758_vm9 = vcmp.lt.s32.totalorder %v6986_v59, 7  ;;  %s8605_s10 = scalar_lea.vmem %s8710_s6, %s5521_s27 }
  0x12   : > { %v6759_v3 = vld [vmem:[%s6751_s30] sm:$0xff]  ;;  %v6762_v4 = vld [vmem:[%s6751_s30 + $0x8] sm:$0xff]  ;;  %v6765_v5 = vld [vmem:[%s6751_s30 + $0x10] sm:$0xff]  ;;  %6097 = vmatprep.subr.bf16.mxu1 %v6614_v43 }
  0x13   : > { %5807 = vmatprep.mubr.msk.f32.mxu0 %vm293_vm1, %v6759_v3  ;;  %v6774_v6 = vld [vmem:[%s6751_s30 + $0x18] sm:$0xff]  ;;  %v6778_v7 = vld [vmem:[%s6751_s30 + $0x20] sm:$0xff]  ;;  %v270_v9 = vld [vmem:[%s6751_s30 + $0x88] sm:$0xff] }
  0x14   : > { %5808 = vmatmul.mubr.msk.f32.vlgmr.msra.gmra.mrb[0].mxu0 %vm293_vm1, %v6762_v4  ;;  %v269_v8 = vld [vmem:[%s6751_s30 + $0x80] sm:$0xff]  ;;  %v6789_v10 = vld [vmem:[%s6751_s30 + $0x28] sm:$0xff]  ;;  %v271_v11 = vld [vmem:[%s6751_s30 + $0x90] sm:$0xff] }
  0x15   : > { %5810 = vmatprep.mubr.msk.f32.mxu0 %vm293_vm1, %v6765_v5  ;;  %5856 = vmatpush3.msk.msra.mxu0 %vm390_vm0, %v753_v1  ;;  %v6794_v12 = vld [vmem:[%s6751_s30 + $0x30] sm:$0xff]  ;;  %v6798_v13 = vld [vmem:[%s6751_s30 + $0x38] sm:$0xff]  ;;  %v6803_v14 = vld [vmem:[%s6751_s30 + $0x40] sm:$0xff] }
  0x16   : > { %5905 = vmatprep.subr.bf16.mxu0 %v6756_v2  ;;  %5881 = vmatprep.mubr.msk.f32.mxu1 %vm293_vm1, %v269_v8  ;;  %v272_v15 = vld [vmem:[%s6751_s30 + $0x98] sm:$0xff]  ;;  %v273_v16 = vld [vmem:[%s6751_s30 + $0xa0] sm:$0xff]  ;;  %v274_v17 = vld [vmem:[%s6751_s30 + $0xa8] sm:$0xff] }
  0x17   : > { %5882 = vmatmul.mubr.msk.f32.vlgmr.msra.gmra.mrb[0].mxu1 %vm293_vm1, %v270_v9  ;;  %v6813_v18 = vld [vmem:[%s6751_s30 + $0x48] sm:$0xff]  ;;  %v275_v19 = vld [vmem:[%s6751_s30 + $0xb0] sm:$0xff]  ;;  %v276_v21 = vld [vmem:[%s6751_s30 + $0xb8] sm:$0xff] }
  0x18   : > { %5811 = vmatmul.mubr.msk.f32.gmra.mrb[2].mxu0 %vm293_vm1, %v6774_v6  ;;  %5884 = vmatprep.mubr.msk.f32.mxu1 %vm293_vm1, %v271_v11  ;;  %v6819_v20 = vld [vmem:[%s6751_s30 + $0x50] sm:$0xff]  ;;  %v6827_v22 = vld [vmem:[%s6751_s30 + $0x58] sm:$0xff]  ;;  %v277_v23 = vld [vmem:[%s6751_s30 + $0xc0] sm:$0xff] }
  0x19   : > { %5813 = vmatprep.mubr.msk.f32.mxu0 %vm293_vm1, %v6778_v7  ;;  %v6833_v24 = vld [vmem:[%s6751_s30 + $0x60] sm:$0xff]  ;;  %v278_v25 = vld [vmem:[%s6751_s30 + $0xc8] sm:$0xff]  ;;  %v279_v27 = vld [vmem:[%s6751_s30 + $0xd0] sm:$0xff]  ;;  %6098 = vmatpush3.bf16.msra.mxu1 %v6614_v43 }
  0x1a   : > { %v6841_v26 = vld [vmem:[%s6751_s30 + $0x68] sm:$0xff]  ;;  %v6847_v28 = vld [vmem:[%s6751_s30 + $0x70] sm:$0xff]  ;;  %v280_v29 = vld [vmem:[%s6751_s30 + $0xd8] sm:$0xff]  ;;  %6099 = vmatprep.subr.bf16.mxu1 %v6616_v45 }
  0x1b   : > { %5885 = vmatmul.mubr.msk.f32.gmra.mrb[2].mxu1 %vm293_vm1, %v272_v15  ;;  %v6855_v30 = vld [vmem:[%s6751_s30 + $0x78] sm:$0xff]  ;;  %v281_v31 = vld [vmem:[%s6751_s30 + $0xe0] sm:$0xff]  ;;  %v282_v32 = vld [vmem:[%s6751_s30 + $0xe8] sm:$0xff] }
  0x1c   : > { %5814 = vmatmul.mubr.msk.f32.gmra.mrb[4].mxu0 %vm293_vm1, %v6789_v10  ;;  %5887 = vmatprep.mubr.msk.f32.mxu1 %vm293_vm1, %v273_v16  ;;  %v283_v33 = vld [vmem:[%s6751_s30 + $0xf0] sm:$0xff]  ;;  %v284_v34 = vld [vmem:[%s6751_s30 + $0xf8] sm:$0xff]  ;;  %v6949_v44 = vld [vmem:[%s8707_s3] sm:$0xff]  }
  0x1d   : > { %5816 = vmatprep.mubr.msk.f32.mxu0 %vm293_vm1, %v6794_v12  ;;  %6100 = vmatpush3.bf16.msra.mxu1 %v6616_v45  ;;  %v6622_v48 = vld [vmem:[%s8707_s3 + $0xe0] sm:$0xff]   ;;  %v6624_v49 = vld [vmem:[%s8707_s3 + $0xe8] sm:$0xff]   ;;  %v6626_v50 = vld [vmem:[%s8707_s3 + $0xf0] sm:$0xff]  }
  0x1e   : > { %6101 = vmatprep.subr.bf16.mxu1 %v6618_v46  ;;  %v6628_v51 = vld [vmem:[%s8707_s3 + $0xf8] sm:$0xff]   ;;  %v6976_v52 = vld [vmem:[%s8707_s3 + $0x140] sm:$0xff]  }
  0x1f   : > { %5888 = vmatmul.mubr.msk.f32.gmra.mrb[4].mxu1 %vm293_vm1, %v274_v17  ;;  %v6982_v53 = vld [vmem:[%s8706_s2] ss:$0 sm:$0xff] }
  0x20   : > { %5817 = vmatmul.mubr.msk.f32.gmra.mrb[6].mxu0 %vm293_vm1, %v6798_v13  ;;  %5890 = vmatprep.mubr.msk.f32.mxu1 %vm293_vm1, %v275_v19 }
  0x21   : > { %5819 = vmatprep.mubr.msk.f32.mxu0 %vm293_vm1, %v6803_v14  ;;  %6102 = vmatpush3.bf16.msra.mxu1 %v6618_v46 }
  0x22   : > { %6103 = vmatprep.subr.bf16.mxu1 %v6620_v47 }
  0x23   : > { %5891 = vmatmul.mubr.msk.f32.gmra.mrb[6].mxu1 %vm293_vm1, %v276_v21 }
  0x24   : > { %5820 = vmatmul.mubr.msk.f32.gmra.mrb[8].mxu0 %vm293_vm1, %v6813_v18  ;;  %5893 = vmatprep.mubr.msk.f32.mxu1 %vm293_vm1, %v277_v23 }
  0x25   : > { %5822 = vmatprep.mubr.msk.f32.mxu0 %vm293_vm1, %v6819_v20  ;;  %6104 = vmatpush3.bf16.msra.mxu1 %v6620_v47 }
  0x26   : > { %6105 = vmatprep.subr.bf16.mxu1 %v6622_v48 }
  0x27   : > { %5894 = vmatmul.mubr.msk.f32.gmra.mrb[8].mxu1 %vm293_vm1, %v278_v25 }
  0x28   : > { %5823 = vmatmul.mubr.msk.f32.gmra.mrb[10].mxu0 %vm293_vm1, %v6827_v22  ;;  %5896 = vmatprep.mubr.msk.f32.mxu1 %vm293_vm1, %v279_v27 }
  0x29   : > { %5825 = vmatprep.mubr.msk.f32.mxu0 %vm293_vm1, %v6833_v24  ;;  %6106 = vmatpush3.bf16.msra.mxu1 %v6622_v48 }
  0x2a   : > { %6107 = vmatprep.subr.bf16.mxu1 %v6624_v49 }
  0x2b   : > { %5897 = vmatmul.mubr.msk.f32.gmra.mrb[10].mxu1 %vm293_vm1, %v280_v29 }
  0x2c   : > { %5826 = vmatmul.mubr.msk.f32.gmra.mrb[12].mxu0 %vm293_vm1, %v6841_v26  ;;  %5899 = vmatprep.mubr.msk.f32.mxu1 %vm293_vm1, %v281_v31 }
  0x2d   : > { %5828 = vmatprep.mubr.msk.f32.mxu0 %vm293_vm1, %v6847_v28  ;;  %6108 = vmatpush3.bf16.msra.mxu1 %v6624_v49 }
  0x2e   : > { %6109 = vmatprep.subr.bf16.mxu1 %v6626_v50 }
  0x2f   : > { %5900 = vmatmul.mubr.msk.f32.gmra.mrb[12].mxu1 %vm293_vm1, %v282_v32 }
  0x30   : > { %5829 = vmatmul.mubr.msk.f32.gmra.mrb[14].mxu0 %vm293_vm1, %v6855_v30  ;;  %5902 = vmatprep.mubr.msk.f32.mxu1 %vm293_vm1, %v283_v33 }
  0x31   : > { %5831 = vmatprep.mubr.msk.f32.mxu0 %vm293_vm1, %v269_v8  ;;  %6110 = vmatpush3.bf16.msra.mxu1 %v6626_v50 }
  0x32   : > { %6111 = vmatprep.subr.bf16.mxu1 %v6628_v51 }
  0x33   : > { %5903 = vmatmul.mubr.msk.f32.gmra.mrb[14].mxu1 %vm293_vm1, %v284_v34 }
  0x34   : > { %5832 = vmatmul.mubr.msk.f32.gmra.mrb[16].mxu0 %vm293_vm1, %v270_v9  ;;  %v6617_v9 = vld [vmem:[%s8707_s3 + $0x8] sm:$0xff]  }
  0x35   : > { %5834 = vmatprep.mubr.msk.f32.mxu0 %vm293_vm1, %v271_v11  ;;  %6112 = vmatpush3.bf16.msra.mxu1 %v6628_v51 }
  0x36   : > { %6145 = vmatprep.subr.bf16.mxu1 %v6976_v52 }
  0x38   : > { %5835 = vmatmul.mubr.msk.f32.gmra.mrb[18].mxu0 %vm293_vm1, %v272_v15 }
  0x39   : > { %5837 = vmatprep.mubr.msk.f32.mxu0 %vm293_vm1, %v273_v16 }
  0x3c   : > { %5838 = vmatmul.mubr.msk.f32.gmra.mrb[20].mxu0 %vm293_vm1, %v274_v17 }
  0x3d   : > { %5840 = vmatprep.mubr.msk.f32.mxu0 %vm293_vm1, %v275_v19 }
  0x40   : > { %5841 = vmatmul.mubr.msk.f32.gmra.mrb[22].mxu0 %vm293_vm1, %v276_v21 }
  0x41   : > { %5843 = vmatprep.mubr.msk.f32.mxu0 %vm293_vm1, %v277_v23  ;;  %v6619_v23 = vld [vmem:[%s8707_s3 + $0x10] sm:$0xff]  }
  0x44   : > { %5844 = vmatmul.mubr.msk.f32.gmra.mrb[24].mxu0 %vm293_vm1, %v278_v25 }
  0x45   : > { %5846 = vmatprep.mubr.msk.f32.mxu0 %vm293_vm1, %v279_v27 }
  0x48   : > { %5847 = vmatmul.mubr.msk.f32.gmra.mrb[26].mxu0 %vm293_vm1, %v280_v29 }
  0x49   : > { %5849 = vmatprep.mubr.msk.f32.mxu0 %vm293_vm1, %v281_v31 }
  0x4c   : > { %5850 = vmatmul.mubr.msk.f32.gmra.mrb[28].mxu0 %vm293_vm1, %v282_v32 }
  0x4d   : > { %5852 = vmatprep.mubr.msk.f32.mxu0 %vm293_vm1, %v283_v33 }
  0x50   : > { %5853 = vmatmul.mubr.msk.f32.gmra.mrb[30].mxu0 %vm293_vm1, %v284_v34 }
  0x51   : > { %5857 = vmatprep.mubr.msk.f32.mxu0 %vm293_vm1, %v6759_v3 }
  0x54   : > { %5858 = vmatmul.mubr.msk.f32.vlgmr.msra.gmra.mrb[32].mxu0 %vm293_vm1, %v6762_v4 }
  0x55   : > { %5906 = vmatpush3.bf16.msra.mxu0 %v6756_v2  ;;  %5860 = vmatprep.mubr.msk.f32.mxu0 %vm293_vm1, %v6765_v5  ;;  %v6687_v2 = vmov 0.0  }
  0x56   : > { %5907 = vmatprep.subr.bf16.mxu0 %v6607_v35  ;;  %v6992_v3 = vrot.slane %v6687_v2, 7 }
  0x58   : > { %5861 = vmatmul.mubr.msk.f32.gmra.mrb[34].mxu0 %vm293_vm1, %v6774_v6 }
  0x59   : > { %5908 = vmatpush3.bf16.msra.mxu0 %v6607_v35  ;;  %5863 = vmatprep.mubr.msk.f32.mxu0 %vm293_vm1, %v6778_v7 }
  0x5a   : > { %5909 = vmatprep.subr.bf16.mxu0 %v6608_v36 }
  0x5c   : > { %5864 = vmatmul.mubr.msk.f32.gmra.mrb[36].mxu0 %vm293_vm1, %v6789_v10 }
  0x5d   : > { %5910 = vmatpush3.bf16.msra.mxu0 %v6608_v36  ;;  %5866 = vmatprep.mubr.msk.f32.mxu0 %vm293_vm1, %v6794_v12 }
  0x5e   : > { %5911 = vmatprep.subr.bf16.mxu0 %v6609_v37 }
  0x60   : > { %5867 = vmatmul.mubr.msk.f32.gmra.mrb[38].mxu0 %vm293_vm1, %v6798_v13 }
  0x61   : > { %5912 = vmatpush3.bf16.msra.mxu0 %v6609_v37  ;;  %5869 = vmatprep.mubr.msk.f32.mxu0 %vm293_vm1, %v6803_v14 }
  0x62   : > { %5913 = vmatprep.subr.bf16.mxu0 %v6610_v38 }
  0x64   : > { %5870 = vmatmul.mubr.msk.f32.gmra.mrb[40].mxu0 %vm293_vm1, %v6813_v18 }
  0x65   : > { %5914 = vmatpush3.bf16.msra.mxu0 %v6610_v38  ;;  %5872 = vmatprep.mubr.msk.f32.mxu0 %vm293_vm1, %v6819_v20 }
  0x66   : > { %5915 = vmatprep.subr.bf16.mxu0 %v6611_v39 }
  0x68   : > { %5873 = vmatmul.mubr.msk.f32.gmra.mrb[42].mxu0 %vm293_vm1, %v6827_v22 }
  0x69   : > { %5916 = vmatpush3.bf16.msra.mxu0 %v6611_v39  ;;  %5875 = vmatprep.mubr.msk.f32.mxu0 %vm293_vm1, %v6833_v24 }
  0x6a   : > { %5917 = vmatprep.subr.bf16.mxu0 %v6612_v40 }
  0x6c   : > { %5876 = vmatmul.mubr.msk.f32.gmra.mrb[44].mxu0 %vm293_vm1, %v6841_v26 }
  0x6d   : > { %5918 = vmatpush3.bf16.msra.mxu0 %v6612_v40  ;;  %5878 = vmatprep.mubr.msk.f32.mxu0 %vm293_vm1, %v6847_v28 }
  0x6e   : > { %5919 = vmatprep.subr.bf16.mxu0 %v6613_v41 }
  0x70   : > { %5879 = vmatmul.mubr.msk.f32.gmra.mrb[46].mxu0 %vm293_vm1, %v6855_v30 }
  0x71   : > { %5920 = vmatpush3.bf16.msra.mxu0 %v6613_v41  ;;  %5921 = vmatprep.mubr.bf16.mxu0 %v8711_v42  ;;  %v6621_v41 = vld [vmem:[%s8707_s3 + $0x18] sm:$0xff]  }
  0x72   : > { %5953 = vmatprep.subr.bf16.mxu0 %v6949_v44 }
  0xe7   : > { %v5809_v55 = vpop.f32.mrb[0].mxu0 }
  0xe8   : > { %v466_v56 = vadd.f32 %v5809_v55, %v6982_v53  ;;  %v460_v57 = vpop.f32.mrb[1].mxu0 }
  0xe9   : > { %v461_v58 = vadd.f32 %v6982_v53, %v460_v57 }
  0xea   : > { %vm620_vm2 = vcmp.gt.f32.partialorder %v466_v56, 0.0  ;;  %v652_v60 = vmul.f32 0.01, %v466_v56 }
  0xeb   : > { %vm619_vm3 = vcmp.gt.f32.partialorder %v461_v58, 0.0  ;;  %v651_v61 = vmul.f32 0.01, %v461_v58  ;;  %v5812_v62 = vpop.f32.mrb[2].mxu0 }
  0xec   : > { %v6988_v63 = vsel %vm620_vm2, %v466_v56, %v652_v60  ;;  %v476_v0 = vadd.f32 %v5812_v62, %v6982_v53  ;;  %v470_v1 = vpop.f32.mrb[3].mxu0 }
  0xed   : > { %v8714_v4 = vrot.slane %v6988_v63, 7  ;;  %v683_v5 = vsel %vm619_vm3, %v461_v58, %v651_v61  ;;  %v471_v6 = vadd.f32 %v6982_v53, %v470_v1  ;;  %v8713_v51 = vrot.slane %v6988_v63, 1  ;;  %v6623_v61 = vld [vmem:[%s8707_s3 + $0x20] sm:$0xff]  }
  0xee   : > { %v6997_v7 = vrot.slane %v683_v5, 7  ;;  %v7000_v8 = vpack.c.bf16 %v6988_v63, %v683_v5  ;;  %vm622_vm5 = vcmp.gt.f32.partialorder %v476_v0, 0.0  ;;  %v654_v10 = vmul.f32 0.01, %v476_v0 }
  0xef   : > { %vm621_vm6 = vcmp.gt.f32.partialorder %v471_v6, 0.0  ;;  %v653_v11 = vmul.f32 0.01, %v471_v6  ;;  %v5815_v12 = vpop.f32.mrb[4].mxu0  ;;  %v7078_v54 = vrot.slane %v683_v5, 1 }
  0xf0   : > { %8803 = vst [vmem:[#allocation4_spill] sm:$0xff] %v7000_v8  ;;  %v486_v13 = vadd.f32 %v5815_v12, %v6982_v53  ;;  %v480_v14 = vpop.f32.mrb[5].mxu0  ;;  %5922 = vmatmul.mubr.bf16.vlgmr.msra.gmra.mrb[48].mxu0 %v7000_v8  ;;  %v7012_v15 = vsel %vm8759_vm4, %v6997_v7, %v8714_v4  ;;  %v7018_v16 = vsel %vm8759_vm4, %v6992_v3, %v6997_v7 }
  0xf1   : > { %v7020_v17 = vsel %vm622_vm5, %v476_v0, %v654_v10  ;;  %v7022_v18 = vsel %vm621_vm6, %v471_v6, %v653_v11  ;;  %v481_v19 = vadd.f32 %v6982_v53, %v480_v14  ;;  %5954 = vmatpush3.bf16.msra.mxu0 %v6949_v44 }
  0xf2   : > { %v1636_v21 = vrot.slane %v7020_v17, 1  ;;  %v7030_v22 = vrot.slane %v7022_v18, 1  ;;  %5955 = vmatprep.subr.bf16.mxu0 %v6617_v9  ;;  %vm624_vm7 = vcmp.gt.f32.partialorder %v486_v13, 0.0  ;;  %v656_v24 = vmul.f32 0.01, %v486_v13 }
  0xf3   : > { %vm623_vm8 = vcmp.gt.f32.partialorder %v481_v19, 0.0  ;;  %v655_v25 = vmul.f32 0.01, %v481_v19  ;;  %v5818_v26 = vpop.f32.mrb[6].mxu0  ;;  %v7038_v27 = vpack.c.bf16 %v7020_v17, %v7022_v18  ;;  %v8715_v28 = vrot.slane %v7020_v17, 7 }
  0xf4   : > { %8804 = vst [vmem:[#allocation5_spill] sm:$0xff] %v7030_v22  ;;  %v7041_v29 = vsel %vm624_vm7, %v486_v13, %v656_v24  ;;  %v496_v31 = vadd.f32 %v5818_v26, %v6982_v53  ;;  %v490_v32 = vpop.f32.mrb[7].mxu0  ;;  %v1690_v33 = vsel %vm8758_vm9, %v7030_v22, %v1636_v21 }
  0xf5   : > { %8805 = vst [vmem:[#allocation6_spill] sm:$0xff] %v7038_v27  ;;  %v7043_v30 = vsel %vm623_vm8, %v481_v19, %v655_v25  ;;  %5956 = vmatpush3.bf16.msra.mxu0 %v6617_v9  ;;  %v1541_v34 = vrot.slane %v7041_v29, 7  ;;  %5925 = vmatprep.mubr.bf16.mxu0 %v7038_v27  ;;  %v491_v38 = vadd.f32 %v6982_v53, %v490_v32 }
  0xf6   : > { %v1540_v35 = vrot.slane %v7043_v30, 7  ;;  %v8712_v36 = vrot.slane %v7043_v30, 1  ;;  %5957 = vmatprep.subr.bf16.mxu0 %v6619_v23  ;;  %vm626_vm10 = vcmp.gt.f32.partialorder %v496_v31, 0.0  ;;  %v658_v37 = vmul.f32 0.01, %v496_v31 }
  0xf7   : > { %v5821_v39 = vpop.f32.mrb[8].mxu0  ;;  %v7056_v40 = vpack.c.bf16 %v7041_v29, %v7043_v30  ;;  %vm625_vm11 = vcmp.gt.f32.partialorder %v491_v38, 0.0  ;;  %v657_v50 = vmul.f32 0.01, %v491_v38  ;;  %v7113_v25 = vsel %vm8758_vm9, %v7078_v54, %v8713_v51 }
  0xf8   : > { %v1689_v43 = vsel %vm8758_vm9, %v1636_v21, %v8712_v36  ;;  %v506_v44 = vadd.f32 %v5821_v39, %v6982_v53  ;;  %v500_v45 = vpop.f32.mrb[9].mxu0  ;;  %v1591_v46 = vsel %vm8759_vm4, %v1540_v35, %v1541_v34  ;;  %v1592_v47 = vsel %vm8759_vm4, %v8715_v28, %v1540_v35  ;;  %v6625_v21 = vld [vmem:[%s8707_s3 + $0x28] sm:$0xff]  }
  0xf9   : > { %8806 = vst [vmem:[#allocation7_spill] sm:$0xff] %v7056_v40  ;;  %v7072_v48 = vpack.c.bf16 %v1689_v43, %v1690_v33  ;;  %v7074_v49 = vsel %vm626_vm10, %v496_v31, %v658_v37  ;;  %5926 = vmatmul.mubr.bf16.gmra.mrb[52].mxu0 %v7056_v40  ;;  %v7081_v57 = vsel %vm625_vm11, %v491_v38, %v657_v50 }
  0xfa   : > { %vm628_vm12 = vcmp.gt.f32.partialorder %v506_v44, 0.0  ;;  %v660_v55 = vmul.f32 0.01, %v506_v44  ;;  %5958 = vmatpush3.bf16.msra.mxu0 %v6619_v23  ;;  %v1543_v56 = vrot.slane %v7074_v49, 7  ;;  %v501_v58 = vadd.f32 %v6982_v53, %v500_v45  ;;  %v6627_v45 = vld [vmem:[%s8707_s3 + $0x30] sm:$0xff]  }
  0xfb   : > { %8807 = vst [vmem:[#allocation8_spill] sm:$0xff] %v7072_v48  ;;  %v5824_v60 = vpop.f32.mrb[10].mxu0  ;;  %5959 = vmatprep.subr.bf16.mxu0 %v6621_v41  ;;  %v7087_v62 = vpack.c.bf16 %v1591_v46, %v1592_v47  ;;  %v1542_v0 = vrot.slane %v7081_v57, 7  ;;  %v7097_v13 = vpack.c.bf16 %v7074_v49, %v7081_v57  ;;  %v8825_v48 = vrot.slane %v7020_v17, 7 }
  0xfc   : > { %v7090_v1 = vsel %vm628_vm12, %v506_v44, %v660_v55  ;;  %v516_v5 = vadd.f32 %v5824_v60, %v6982_v53  ;;  %v510_v6 = vpop.f32.mrb[11].mxu0  ;;  %vm627_vm13 = vcmp.gt.f32.partialorder %v501_v58, 0.0  ;;  %v659_v10 = vmul.f32 0.01, %v501_v58 }
  0xfd   : > { %v1545_v9 = vrot.slane %v7090_v1, 7  ;;  %v511_v12 = vadd.f32 %v6982_v53, %v510_v6  ;;  %8808 = vst [vmem:[#allocation9_spill] sm:$0xff] %v7097_v13  ;;  %v1589_v23 = vsel %vm8759_vm4, %v1542_v0, %v1543_v56  ;;  %v1590_v24 = vsel %vm8759_vm4, %v1541_v34, %v1542_v0  ;;  %5929 = vmatprep.mubr.bf16.mxu0 %v7097_v13 }
  0xfe   : > { %vm630_vm14 = vcmp.gt.f32.partialorder %v516_v5, 0.0  ;;  %v662_v11 = vmul.f32 0.01, %v516_v5  ;;  %5960 = vmatpush3.bf16.msra.mxu0 %v6621_v41  ;;  %v7099_v14 = vsel %vm627_vm13, %v501_v58, %v659_v10  ;;  %v7122_v34 = vrot.slane %v6687_v2, 1  ;;  %v6629_v10 = vld [vmem:[%s8707_s3 + $0x38] sm:$0xff]  }
  0xff   : > { %v5827_v19 = vpop.f32.mrb[12].mxu0  ;;  %5961 = vmatprep.subr.bf16.mxu0 %v6623_v61  ;;  %v1544_v26 = vrot.slane %v7099_v14, 7  ;;  %vm629_vm15 = vcmp.gt.f32.partialorder %v511_v12, 0.0  ;;  %v661_v33 = vmul.f32 0.01, %v511_v12  ;;  %v7127_v38 = vpack.c.bf16 %v7090_v1, %v7099_v14 }
 0x100   : > { %v520_v31 = vpop.f32.mrb[13].mxu0  ;;  %v7118_v32 = vsel %vm630_vm14, %v516_v5, %v662_v11  ;;  %v526_v35 = vadd.f32 %v5827_v19, %v6982_v53  ;;  %8809 = vst [vmem:[#allocation10_spill] sm:$0xff] %v7122_v34  ;;  %v7129_v39 = vpack.c.bf16 %v1589_v23, %v1590_v24  ;;  %v7160_v11 = vadd.s32 16, %v6986_v59 }
 0x101   : > { %v521_v37 = vadd.f32 %v6982_v53, %v520_v31  ;;  %8810 = vst [vmem:[#allocation11_spill] sm:$0xff] %v7127_v38  ;;  %v1587_v41 = vsel %vm8759_vm4, %v1544_v26, %v1545_v9  ;;  %v7135_v43 = vsel %vm629_vm15, %v511_v12, %v661_v33  ;;  %v1588_v46 = vsel %vm8759_vm4, %v1543_v56, %v1544_v26 }
 0x102   : > { %5962 = vmatpush3.bf16.msra.mxu0 %v6623_v61  ;;  %8811 = vst [vmem:[#allocation12_spill] sm:$0xff] %v7129_v39  ;;  %vm632_vm0 = vcmp.gt.f32.partialorder %v526_v35, 0.0  ;;  %v664_v44 = vmul.f32 0.01, %v526_v35  ;;  %v1547_v47 = vrot.slane %v7118_v32, 7  ;;  %v1546_v50 = vrot.slane %v7135_v43, 7 }
 0x103   : > { %v5830_v2 = vpop.f32.mrb[14].mxu0  ;;  %5963 = vmatprep.subr.bf16.mxu0 %v6625_v21  ;;  %vm631_vm1 = vcmp.gt.f32.partialorder %v521_v37, 0.0  ;;  %v663_v55 = vmul.f32 0.01, %v521_v37  ;;  %5930 = vmatmul.mubr.bf16.gmra.mrb[56].mxu0 %v7127_v38  ;;  %v7151_v5 = vpack.c.bf16 %v7118_v32, %v7135_v43  ;;  %v7162_v12 = vpack.c.bf16 %v1587_v41, %v1588_v46 }
 0x104   : > { %v530_v58 = vpop.f32.mrb[15].mxu0  ;;  %v7145_v60 = vsel %vm632_vm0, %v526_v35, %v664_v44  ;;  %v536_v61 = vadd.f32 %v5830_v2, %v6982_v53  ;;  %v1585_v44 = vsel %vm8759_vm4, %v1546_v50, %v1547_v47  ;;  %v1586_v2 = vsel %vm8759_vm4, %v1545_v9, %v1546_v50 }
 0x105   : > { %v531_v0 = vadd.f32 %v6982_v53, %v530_v58  ;;  %8812 = vst [vmem:[#allocation13_spill] sm:$0xff] %v7151_v5  ;;  %v7153_v56 = vsel %vm631_vm1, %v521_v37, %v663_v55  ;;  %8813 = vst [vmem:[#allocation14_spill] sm:$0xff] %v7162_v12  ;;  %v1549_v19 = vrot.slane %v7145_v60, 7  ;;  %5933 = vmatprep.mubr.bf16.mxu0 %v7151_v5  ;;  %v7185_v58 = vadd.s32 32, %v6986_v59 }
 0x106   : > { %5964 = vmatpush3.bf16.msra.mxu0 %v6625_v21  ;;  %v1548_v23 = vrot.slane %v7153_v56, 7  ;;  %vm634_vm2 = vcmp.gt.f32.partialorder %v536_v61, 0.0  ;;  %v666_v24 = vmul.f32 0.01, %v536_v61  ;;  %v7170_v35 = vpack.c.bf16 %v7145_v60, %v7153_v56 }
 0x107   : > { %v5833_v21 = vpop.f32.mrb[16].mxu0  ;;  %5965 = vmatprep.subr.bf16.mxu0 %v6627_v45  ;;  %vm633_vm3 = vcmp.gt.f32.partialorder %v531_v0, 0.0  ;;  %v665_v26 = vmul.f32 0.01, %v531_v0  ;;  %v7200_v42 = vpack.c.bf16 %v1585_v44, %v1586_v2  ;;  %v7215_v2 = vadd.s32 48, %v6986_v59 }
 0x108   : > { %v546_v31 = vadd.f32 %v5833_v21, %v6982_v53  ;;  %v540_v33 = vpop.f32.mrb[17].mxu0  ;;  %8814 = vst [vmem:[#allocation15_spill] sm:$0xff] %v7170_v35  ;;  %v7172_v37 = vsel %vm634_vm2, %v536_v61, %v666_v24  ;;  %v7190_v61 = vld [vmem:[%s8707_s3 + $0x80] sm:$0xff]   ;;  %v1583_v51 = vsel %vm8759_vm4, %v1548_v23, %v1549_v19  ;;  %v1584_v55 = vsel %vm8759_vm4, %v1547_v47, %v1548_v23 }
 0x109   : > { %v541_v41 = vadd.f32 %v6982_v53, %v540_v33  ;;  %v7181_v46 = vsel %vm633_vm3, %v531_v0, %v665_v26  ;;  %v1551_v24 = vrot.slane %v7172_v37, 7  ;;  %8816 = vst [vmem:[#allocation17_spill] sm:$0xff] %v7200_v42  ;;  %v7239_v5 = vadd.s32 64, %v6986_v59 }
 0x10a   : > { %vm636_vm5 = vcmp.gt.f32.partialorder %v546_v31, 0.0  ;;  %5966 = vmatpush3.bf16.msra.mxu0 %v6627_v45  ;;  %v1550_v21 = vrot.slane %v7181_v46, 7  ;;  %v668_v33 = vmul.f32 0.01, %v546_v31  ;;  %v7198_v26 = vpack.c.bf16 %v7172_v37, %v7181_v46 }
 0x10b   : > { %vm635_vm6 = vcmp.gt.f32.partialorder %v541_v41, 0.0  ;;  %v5836_v9 = vpop.f32.mrb[18].mxu0  ;;  %5967 = vmatprep.subr.bf16.mxu0 %v6629_v10  ;;  %v667_v50 = vmul.f32 0.01, %v541_v41  ;;  %5934 = vmatmul.mubr.bf16.gmra.mrb[60].mxu0 %v7170_v35 }
 0x10c   : > { %v556_v45 = vadd.f32 %v5836_v9, %v6982_v53  ;;  %v550_v0 = vpop.f32.mrb[19].mxu0  ;;  %8815 = vst [vmem:[#allocation16_spill] sm:$0xff] %v7198_v26  ;;  %v7203_v20 = vsel %vm636_vm5, %v546_v31, %v668_v33  ;;  %5937 = vmatprep.mubr.bf16.mxu0 %v7198_v26  ;;  %v1581_v28 = vsel %vm8759_vm4, %v1550_v21, %v1551_v24 }
 0x10d   : > { %v551_v36 = vadd.f32 %v6982_v53, %v550_v0  ;;  %v7210_v6 = vsel %vm635_vm6, %v541_v41, %v667_v50  ;;  %v1553_v31 = vrot.slane %v7203_v20, 7  ;;  %v7225_v50 = vpack.c.bf16 %v1583_v51, %v1584_v55 }
 0x10e   : > { %vm638_vm7 = vcmp.gt.f32.partialorder %v556_v45, 0.0  ;;  %5968 = vmatpush3.bf16.msra.mxu0 %v6629_v10  ;;  %v1552_v33 = vrot.slane %v7210_v6, 7  ;;  %v670_v9 = vmul.f32 0.01, %v556_v45  ;;  %v7223_v10 = vpack.c.bf16 %v7203_v20, %v7210_v6 }
 0x10f   : > { %vm637_vm8 = vcmp.gt.f32.partialorder %v551_v36, 0.0  ;;  %v5839_v0 = vpop.f32.mrb[20].mxu0  ;;  %6001 = vmatprep.subr.bf16.mxu0 %v7190_v61  ;;  %v669_v47 = vmul.f32 0.01, %v551_v36  ;;  %8818 = vst [vmem:[#allocation19_spill] sm:$0xff] %v7225_v50  ;;  %v1582_v26 = vsel %vm8759_vm4, %v1549_v19, %v1550_v21 }
 0x110   : > { %v566_v23 = vadd.f32 %v5839_v0, %v6982_v53  ;;  %v560_v41 = vpop.f32.mrb[21].mxu0  ;;  %8817 = vst [vmem:[#allocation18_spill] sm:$0xff] %v7223_v10  ;;  %v7228_v44 = vsel %vm638_vm7, %v556_v45, %v670_v9  ;;  %v1579_v13 = vsel %vm8759_vm4, %v1552_v33, %v1553_v31  ;;  %v1580_v40 = vsel %vm8759_vm4, %v1551_v24, %v1552_v33 }
 0x111   : > { %v561_v4 = vadd.f32 %v6982_v53, %v560_v41  ;;  %v7235_v35 = vsel %vm637_vm8, %v551_v36, %v669_v47  ;;  %v1555_v51 = vrot.slane %v7228_v44, 7  ;;  %v7249_v47 = vpack.c.bf16 %v1581_v28, %v1582_v26 }
 0x112   : > { %vm640_vm10 = vcmp.gt.f32.partialorder %v566_v23, 0.0  ;;  %v1554_v55 = vrot.slane %v7235_v35, 7  ;;  %v672_v45 = vmul.f32 0.01, %v566_v23  ;;  %v7247_v21 = vpack.c.bf16 %v7228_v44, %v7235_v35 }
 0x113   : > { %vm639_vm11 = vcmp.gt.f32.partialorder %v561_v4, 0.0  ;;  %v5842_v9 = vpop.f32.mrb[22].mxu0  ;;  %v671_v41 = vmul.f32 0.01, %v561_v4  ;;  %5938 = vmatmul.mubr.bf16.gmra.mrb[64].mxu0 %v7223_v10  ;;  %8820 = vst [vmem:[#allocation21_spill] sm:$0xff] %v7249_v47  ;;  %v7259_v10 = vrot.slane %v7022_v18, 7  ;;  %v7272_v18 = vpack.c.bf16 %v1579_v13, %v1580_v40 }
 0x114   : > { %v576_v19 = vadd.f32 %v5842_v9, %v6982_v53  ;;  %v570_v36 = vpop.f32.mrb[23].mxu0  ;;  %8819 = vst [vmem:[#allocation20_spill] sm:$0xff] %v7247_v21  ;;  %v7251_v0 = vsel %vm640_vm10, %v566_v23, %v672_v45  ;;  %5941 = vmatprep.mubr.bf16.mxu0 %v7247_v21  ;;  %v1577_v21 = vsel %vm8759_vm4, %v1554_v55, %v1555_v51  ;;  %v7291_v40 = vadd.s32 80, %v6986_v59 }
 0x115   : > { %v571_v38 = vadd.f32 %v6982_v53, %v570_v36  ;;  %8821 = vst [vmem:[#allocation22_spill] sm:$0xff] %v7259_v10  ;;  %v7261_v9 = vsel %vm639_vm11, %v561_v4, %v671_v41  ;;  %v1557_v26 = vrot.slane %v7251_v0, 7  ;;  %8823 = vst [vmem:[#allocation24_spill] sm:$0xff] %v7272_v18  ;;  %v1578_v27 = vsel %vm8759_vm4, %v1553_v31, %v1554_v55 }
 0x116   : > { %vm642_vm12 = vcmp.gt.f32.partialorder %v576_v19, 0.0  ;;  %v1556_v23 = vrot.slane %v7261_v9, 7  ;;  %v674_v45 = vmul.f32 0.01, %v576_v19  ;;  %v7270_v4 = vpack.c.bf16 %v7251_v0, %v7261_v9 }
 0x117   : > { %vm641_vm13 = vcmp.gt.f32.partialorder %v571_v38, 0.0  ;;  %v5845_v36 = vpop.f32.mrb[24].mxu0  ;;  %v673_v8 = vmul.f32 0.01, %v571_v38  ;;  %vm6688_vm11 = vmmov 1  }
 0x118   : > { %v586_v24 = vadd.f32 %v5845_v36, %v6982_v53  ;;  %v580_v33 = vpop.f32.mrb[25].mxu0  ;;  %8822 = vst [vmem:[#allocation23_spill] sm:$0xff] %v7270_v4  ;;  %v7274_v41 = vsel %vm642_vm12, %v576_v19, %v674_v45  ;;  %v7286_v36 = vsel %vm8759_vm4, %v7259_v10, %v8825_v48  ;;  %v1575_v50 = vsel %vm8759_vm4, %v1556_v23, %v1557_v26 }
 0x119   : > { %8824 = vst [vmem:[#allocation25_spill] sm:$0xff] %v7274_v41  ;;  %v581_v28 = vadd.f32 %v6982_v53, %v580_v33  ;;  %v7288_v47 = vsel %vm641_vm13, %v571_v38, %v673_v8  ;;  %v1559_v13 = vrot.slane %v7274_v41, 7  ;;  %v7301_v38 = vpack.c.bf16 %v1577_v21, %v1578_v27 }
 0x11a   : > { %vm644_vm14 = vcmp.gt.f32.partialorder %v586_v24, 0.0  ;;  %v1558_v19 = vrot.slane %v7288_v47, 7  ;;  %v676_v45 = vmul.f32 0.01, %v586_v24  ;;  %v7299_v8 = vpack.c.bf16 %v7274_v41, %v7288_v47 }
 0x11b   : > { %vm643_vm15 = vcmp.gt.f32.partialorder %v581_v28, 0.0  ;;  %v5848_v31 = vpop.f32.mrb[26].mxu0  ;;  %v675_v55 = vmul.f32 0.01, %v581_v28  ;;  %5942 = vmatmul.mubr.bf16.gmra.mrb[68].mxu0 %v7270_v4  ;;  %8827 = vst [vmem:[#allocation27_spill] sm:$0xff] %v7301_v38  ;;  %v1576_v42 = vsel %vm8759_vm4, %v1555_v51, %v1556_v23  ;;  %v8831_v23 = vand.u32 15, %v6986_v59 }
 0x11c   : > { %v596_v17 = vadd.f32 %v5848_v31, %v6982_v53  ;;  %v590_v48 = vpop.f32.mrb[27].mxu0  ;;  %8826 = vst [vmem:[#allocation26_spill] sm:$0xff] %v7299_v8  ;;  %v7303_v33 = vsel %vm644_vm14, %v586_v24, %v676_v45  ;;  %v8829_v31 = vrot.slane %v6988_v63, 7  ;;  %5945 = vmatprep.mubr.bf16.mxu0 %v7299_v8  ;;  %v1574_v39 = vsel %vm8759_vm4, %v1557_v26, %v1558_v19 }
 0x11d   : > { %8828 = vst [vmem:[#allocation28_spill] sm:$0xff] %v7303_v33  ;;  %v591_v18 = vadd.f32 %v6982_v53, %v590_v48  ;;  %v7318_v21 = vsel %vm643_vm15, %v581_v28, %v675_v55  ;;  %v1561_v24 = vrot.slane %v7303_v33, 7  ;;  %vm7325_vm2 = vcmp.gt.s32.totalorder %v8831_v23, 0 }
 0x11e   : > { %v7315_v4 = vsel %vm8759_vm4, %v8829_v31, %v7259_v10  ;;  %8830 = vst [vmem:[#allocation29_spill] sm:$0xff] %v7318_v21  ;;  %vm646_vm0 = vcmp.gt.f32.partialorder %v596_v17, 0.0  ;;  %v1560_v45 = vrot.slane %v7318_v21, 7  ;;  %v678_v48 = vmul.f32 0.01, %v596_v17  ;;  %vm7412_vm12 = vmpackc.low %vm6688_vm11, %vm7325_vm2 }
 0x11f   : > { %vm645_vm1 = vcmp.gt.f32.partialorder %v591_v18, 0.0  ;;  %v5851_v51 = vpop.f32.mrb[28].mxu0  ;;  %v677_v31 = vmul.f32 0.01, %v591_v18  ;;  %v7332_v27 = vpack.c.bf16 %v7303_v33, %v7318_v21  ;;  %v7334_v10 = vpack.c.bf16 %v1575_v50, %v1576_v42 }
 0x120   : > { %v606_v28 = vadd.f32 %v5851_v51, %v6982_v53  ;;  %v600_v55 = vpop.f32.mrb[29].mxu0  ;;  %v7336_v8 = vsel %vm646_vm0, %v596_v17, %v678_v48  ;;  %v1573_v23 = vsel %vm8759_vm4, %v1558_v19, %v1559_v13  ;;  %v8836_v33 = vand.u32 15, %v7160_v11 }
 0x121   : > { %8834 = vst [vmem:[#allocation30_spill] sm:$0xff] %v7332_v27  ;;  %8835 = vst [vmem:[#allocation31_spill] sm:$0xff] %v7334_v10  ;;  %v601_v12 = vadd.f32 %v6982_v53, %v600_v55  ;;  %v7344_v51 = vsel %vm645_vm1, %v591_v18, %v677_v31  ;;  %v8839_v50 = vrot.slane %v6988_v63, 1  ;;  %v1563_v48 = vrot.slane %v7336_v8, 7 }
 0x122   : > { %vm648_vm3 = vcmp.gt.f32.partialorder %v606_v28, 0.0  ;;  %vm7348_vm5 = vcmp.gt.s32.totalorder %v8836_v33, 0  ;;  %v1562_v26 = vrot.slane %v7344_v51, 7  ;;  %v680_v19 = vmul.f32 0.01, %v606_v28 }
 0x123   : > { %v1691_v17 = vsel %vm8758_vm9, %v8839_v50, %v7030_v22  ;;  %vm647_vm6 = vcmp.gt.f32.partialorder %v601_v12, 0.0  ;;  %v5854_v18 = vpop.f32.mrb[30].mxu0  ;;  %v8840_v31 = vand.u32 15, %v7185_v58  ;;  %v679_v33 = vmul.f32 0.01, %v601_v12  ;;  %5946 = vmatmul.mubr.bf16.gmra.mrb[72].mxu0 %v7332_v27  ;;  %vm7446_vm13 = vmpackc.low %vm6688_vm11, %vm7348_vm5 }
 0x124   : > { %v616_v63 = vadd.f32 %v5854_v18, %v6982_v53  ;;  %v610_v55 = vpop.f32.mrb[31].mxu0  ;;  %v7369_v50 = vpack.c.bf16 %v7336_v8, %v7344_v51  ;;  %v7371_v41 = vpack.c.bf16 %v1573_v23, %v1574_v39  ;;  %v7373_v22 = vsel %vm648_vm3, %v606_v28, %v680_v19 }
 0x125   : > { %vm7361_vm7 = vcmp.gt.s32.totalorder %v8840_v31, 0  ;;  %v611_v58 = vadd.f32 %v6982_v53, %v610_v55  ;;  %v1571_v31 = vsel %vm8759_vm4, %v1560_v45, %v1561_v24  ;;  %v1572_v10 = vsel %vm8759_vm4, %v1559_v13, %v1560_v45 }
 0x126   : > { %8843 = vst [vmem:[#allocation32_spill] sm:$0xff] %v7369_v50  ;;  %8844 = vst [vmem:[#allocation33_spill] sm:$0xff] %v7371_v41  ;;  %v1639_v27 = vrot.slane %v7081_v57, 1  ;;  %v1565_v18 = vrot.slane %v7373_v22, 7  ;;  %v7382_v21 = vsel %vm647_vm6, %v601_v12, %v679_v33  ;;  %vm650_vm8 = vcmp.gt.f32.partialorder %v616_v63, 0.0  ;;  %5949 = vmatprep.mubr.bf16.mxu0 %v7369_v50 }
 0x127   : > { %v1642_v39 = vrot.slane %v7090_v1, 1  ;;  %v1564_v28 = vrot.slane %v7382_v21, 7  ;;  %v682_v53 = vmul.f32 0.01, %v616_v63  ;;  %vm649_vm10 = vcmp.gt.f32.partialorder %v611_v58, 0.0  ;;  %vm7463_vm14 = vmpackc.low %vm6688_vm11, %vm7361_vm7 }
 0x128   : > { %v681_v23 = vmul.f32 0.01, %v611_v58  ;;  %v7389_v19 = vpack.c.bf16 %v7373_v22, %v7382_v21  ;;  %v1598_v57 = vsel %vm8759_vm4, %v1565_v18, %v6992_v3  ;;  %v7394_v12 = vpack.c.bf16 %v1571_v31, %v1572_v10  ;;  %v6675_v10 = vld [vmem:[%s8707_s3 + $0x228] sm:$0xff]  }
 0x129   : > { %v7396_v13 = vsel %vm650_vm8, %v616_v63, %v682_v53  ;;  %v5064_v45 = vpack.c.bf16 %v6992_v3, %v1598_v57  ;;  %v1569_v1 = vsel %vm8759_vm4, %v1562_v26, %v1563_v48  ;;  %v1570_v33 = vsel %vm8759_vm4, %v1561_v24, %v1562_v26  ;;  %v6677_v57 = vld [vmem:[%s8707_s3 + $0x238] sm:$0xff]  }
 0x12a   : > { %v1641_v55 = vrot.slane %v7099_v14, 1  ;;  %v7405_v50 = vrot.slane %v7396_v13, 7  ;;  %v7407_v41 = vsel %vm649_vm10, %v611_v58, %v681_v23  ;;  %v7416_v63 = vpack.c.bf16 %v1569_v1, %v1570_v33 }
 0x12b   : > { %v1643_v31 = vrot.slane %v7135_v43, 1  ;;  %v2643_v24 = vrot.slane %v7407_v41, 7  ;;  %v1567_v14 = vsel %vm8759_vm4, %v1564_v28, %v1565_v18  ;;  %v1568_v26 = vsel %vm8759_vm4, %v1563_v48, %v1564_v28  ;;  %5950 = vmatmul.mubr.bf16.gmra.mrb[76].mxu0 %v7389_v19 }
 0x12c   : > { %8845 = vst [vmem:[#allocation34_spill] sm:$0xff] %v7405_v50  ;;  %v2676_v38 = vsel %vm8759_vm4, %v7405_v50, %v6997_v7  ;;  %v7429_v58 = vpack.c.bf16 %v1567_v14, %v1568_v26  ;;  %v7432_v53 = vpack.c.bf16 %v1691_v17, %v7113_v25  ;;  %v7438_v43 = vsel %vm8758_vm9, %v7122_v34, %v7078_v54  ;;  %v6676_v7 = vld [vmem:[%s8707_s3 + $0x230] sm:$0xff]  }
 0x12d   : > { %5969 = vmatprep.mubr.msk.bf16.mxu0 %vm7412_vm12, %v5064_v45  ;;  %v5232_v48 = vpack.c.bf16 %v7012_v15, %v2676_v38  ;;  %v2645_v25 = vsel %vm8759_vm4, %v2643_v24, %v7405_v50  ;;  %v2646_v17 = vsel %vm8759_vm4, %v1565_v18, %v2643_v24  ;;  %v5070_v23 = vpack.c.bf16 %v7286_v36, %v7315_v4  ;;  %v6631_v45 = vld [vmem:[%s8707_s3 + $0x148] sm:$0xff]  }
 0x12e   : > { %v1644_v42 = vrot.slane %v7118_v32, 1  ;;  %v7470_v18 = vpack.c.bf16 %v2645_v25, %v2646_v17  ;;  %v8852_v1 = vrot.slane %v7041_v29, 1  ;;  %v1645_v32 = vrot.slane %v7153_v56, 1 }
 0x12f   : > { %6113 = vmatprep.mubr.msk.bf16.mxu1 %vm7412_vm12, %v5232_v48  ;;  %v8854_v33 = vrot.slane %v7043_v30, 1  ;;  %v8855_v14 = vrot.slane %v7074_v49, 1  ;;  %v1647_v25 = vrot.slane %v7181_v46, 1  ;;  %v1128_v29 = vand.u32 15, %v7291_v40 }
 0x130   : > { %v1687_v4 = vsel %vm8758_vm9, %v8852_v1, %v1639_v27  ;;  %v8853_v11 = vmov %v8852_v1  ;;  %6114 = vmatmul.mubr.msk.bf16.vlgmr.msra.gmra.mrb[16].mxu1 %vm7446_vm13, %v5070_v23  ;;  %v1646_v17 = vrot.slane %v7145_v60, 1  ;;  %v1649_v1 = vrot.slane %v7210_v6, 1  ;;  %v8872_v60 = vld [vmem:[#allocation12_spill] sm:$0xff] }
 0x131   : > { %v1688_v24 = vsel %vm8758_vm9, %v8854_v33, %v8853_v11  ;;  %v1685_v26 = vsel %vm8758_vm9, %v8855_v14, %v1641_v55  ;;  %v8856_v38 = vmov %v8855_v14  ;;  %6146 = vmatpush3.bf16.msra.mxu1 %v6976_v52  ;;  %6117 = vmatprep.mubr.msk.bf16.mxu1 %vm7463_vm14, %v7087_v62  ;;  %v1683_v49 = vsel %vm8758_vm9, %v1642_v39, %v1643_v31  ;;  %v6632_v52 = vld [vmem:[%s8707_s3 + $0x150] sm:$0xff]  }
 0x132   : > { %v1686_v56 = vsel %vm8758_vm9, %v1639_v27, %v8856_v38  ;;  %v7497_v30 = vpack.c.bf16 %v1687_v4, %v1688_v24  ;;  %v1684_v46 = vsel %vm8758_vm9, %v1641_v55, %v1642_v39  ;;  %v1648_v40 = vrot.slane %v7172_v37, 1  ;;  %6147 = vmatprep.subr.bf16.mxu1 %v6631_v45 }
 0x133   : > { %v7499_v48 = vpack.c.bf16 %v1685_v26, %v1686_v56  ;;  %v8857_v27 = vand.u32 15, %v7215_v2  ;;  %v1034_v6 = vadd.s32 96, %v6986_v59  ;;  %v7522_v4 = vpack.c.bf16 %v1683_v49, %v1684_v46  ;;  %v6636_v2 = vld [vmem:[%s8707_s3 + $0x88] sm:$0xff]  }
 0x134   : > { %v1651_v11 = vrot.slane %v7235_v35, 1  ;;  %v8860_v39 = vand.u32 15, %v7239_v5  ;;  %v1681_v55 = vsel %vm8758_vm9, %v1644_v42, %v1645_v32  ;;  %v1682_v33 = vsel %vm8758_vm9, %v1643_v31, %v1644_v42  ;;  %v6633_v42 = vld [vmem:[%s8707_s3 + $0x158] sm:$0xff]   ;;  %v8870_v56 = vld [vmem:[#allocation29_spill] sm:$0xff] }
 0x135   : > { %vm7514_vm15 = vcmp.gt.s32.totalorder %v8857_v27, 0  ;;  %v1650_v24 = vrot.slane %v7203_v20, 1  ;;  %v1653_v35 = vrot.slane %v7261_v9, 1  ;;  %v8863_v5 = vpack.c.bf16 %v7012_v15, %v7018_v16  ;;  %6148 = vmatpush3.bf16.msra.mxu1 %v6631_v45  ;;  %v6637_v15 = vld [vmem:[%s8707_s3 + $0x168] sm:$0xff]  }
 0x136   : > { %vm7527_vm0 = vcmp.gt.s32.totalorder %v8860_v39, 0  ;;  %v7545_v14 = vpack.c.bf16 %v1681_v55, %v1682_v33  ;;  %v1679_v26 = vsel %vm8758_vm9, %v1646_v17, %v1647_v25  ;;  %v1652_v38 = vrot.slane %v7228_v44, 1  ;;  %vm7555_vm1 = vmpackc.low %vm6688_vm11, %vm7514_vm15  ;;  %6149 = vmatprep.subr.bf16.mxu1 %v6632_v52  ;;  %v8873_v39 = vld [vmem:[#allocation14_spill] sm:$0xff] }
 0x137   : > { %5970 = vmatmul.mubr.msk.bf16.vlgmr.msra.gmra.mrb[48].mxu0 %vm7446_vm13, %v8863_v5  ;;  %vm7559_vm2 = vcmp.gt.s32.totalorder %v1128_v29, 0  ;;  %v1680_v16 = vsel %vm8758_vm9, %v1645_v32, %v1646_v17  ;;  %v1677_v44 = vsel %vm8758_vm9, %v1648_v40, %v1649_v1  ;;  %v1655_v9 = vrot.slane %v7288_v47, 1  ;;  %vm7571_vm3 = vmpackc.low %vm6688_vm11, %vm7527_vm0  ;;  %v6638_v17 = vld [vmem:[%s8707_s3 + $0x90] sm:$0xff]   ;;  %v8874_v5 = vld [vmem:[#allocation28_spill] sm:$0xff] }
 0x138   : > { %5973 = vmatprep.mubr.msk.bf16.mxu0 %vm7463_vm14, %v5070_v23  ;;  %v1142_v23 = vand.u32 15, %v1034_v6  ;;  %6002 = vmatpush3.bf16.msra.mxu0 %v7190_v61  ;;  %v7579_v45 = vpack.c.bf16 %v1679_v26, %v1680_v16  ;;  %v1678_v47 = vsel %vm8758_vm9, %v1647_v25, %v1648_v40  ;;  %v1654_v32 = vrot.slane %v7251_v0, 1  ;;  %v8871_v61 = vld [vmem:[#allocation25_spill] sm:$0xff]  ;;  %vm7647_vm6 = vmpackc.low %vm6688_vm11, %vm7559_vm2 }
 0x139   : > { %v1657_v29 = vrot.slane %v8870_v56, 1  ;;  %6003 = vmatprep.subr.bf16.mxu0 %v6636_v2  ;;  %v7588_v49 = vpack.c.bf16 %v1677_v44, %v1678_v47  ;;  %v1675_v46 = vsel %vm8758_vm9, %v1650_v24, %v1651_v11  ;;  %v1656_v27 = vrot.slane %v8871_v61, 1  ;;  %6118 = vmatmul.mubr.msk.bf16.gmra.mrb[20].mxu1 %vm7555_vm1, %v8872_v60 }
 0x13a   : > { %v1036_v0 = vadd.s32 112, %v6986_v59  ;;  %v1676_v25 = vsel %vm8758_vm9, %v1649_v1, %v1650_v24  ;;  %v1673_v40 = vsel %vm8758_vm9, %v1652_v38, %v1653_v35  ;;  %v1659_v6 = vrot.slane %v7344_v51, 1  ;;  %6121 = vmatprep.mubr.msk.bf16.mxu1 %vm7571_vm3, %v8873_v39  ;;  %6150 = vmatpush3.bf16.msra.mxu1 %v6632_v52  ;;  %v6634_v51 = vld [vmem:[%s8707_s3 + $0x160] sm:$0xff]  }
 0x13b   : > { %v1038_v37 = vadd.s32 128, %v6986_v59  ;;  %v7606_v55 = vpack.c.bf16 %v1675_v46, %v1676_v25  ;;  %v1674_v33 = vsel %vm8758_vm9, %v1651_v11, %v1652_v38  ;;  %v1658_v26 = vrot.slane %v8874_v5, 1  ;;  %6151 = vmatprep.subr.bf16.mxu1 %v6633_v42 }
 0x13c   : > { %v1661_v1 = vrot.slane %v7382_v21, 1  ;;  %6004 = vmatpush3.bf16.msra.mxu0 %v6636_v2  ;;  %v7615_v24 = vpack.c.bf16 %v1673_v40, %v1674_v33  ;;  %v1671_v52 = vsel %vm8758_vm9, %v1654_v32, %v1655_v9  ;;  %v1660_v16 = vrot.slane %v7336_v8, 1  ;;  %v6639_v21 = vld [vmem:[%s8707_s3 + $0x98] sm:$0xff]  }
 0x13d   : > { %vm7620_vm5 = vcmp.gt.s32.totalorder %v1142_v23, 0  ;;  %6005 = vmatprep.subr.bf16.mxu0 %v6638_v17  ;;  %v1672_v11 = vsel %vm8758_vm9, %v1653_v35, %v1654_v32  ;;  %v1669_v2 = vsel %vm8758_vm9, %v1656_v27, %v1657_v29  ;;  %v1662_v38 = vrot.slane %v7373_v22, 1  ;;  %v8885_v33 = vld [vmem:[#allocation19_spill] sm:$0xff] }
 0x13e   : > { %v1156_v8 = vand.u32 15, %v1036_v0  ;;  %v7635_v23 = vpack.c.bf16 %v1671_v52, %v1672_v11  ;;  %v1670_v47 = vsel %vm8758_vm9, %v1655_v9, %v1656_v27  ;;  %v2740_v56 = vrot.slane %v7396_v13, 1  ;;  %6152 = vmatpush3.bf16.msra.mxu1 %v6633_v42  ;;  %vm7658_vm7 = vmpackc.low %vm6688_vm11, %vm7620_vm5  ;;  %v6641_v0 = vld [vmem:[%s8707_s3 + $0xa0] sm:$0xff]  }
 0x13f   : > { %5974 = vmatmul.mubr.msk.bf16.gmra.mrb[52].mxu0 %vm7555_vm1, %v7087_v62  ;;  %v2739_v46 = vrot.slane %v7407_v41, 1  ;;  %v7651_v35 = vpack.c.bf16 %v1669_v2, %v1670_v47  ;;  %v1667_v9 = vsel %vm8758_vm9, %v1658_v26, %v1659_v6  ;;  %v1170_v61 = vand.u32 15, %v1038_v37  ;;  %6153 = vmatprep.subr.bf16.mxu1 %v6634_v51  ;;  %v8883_v37 = vld [vmem:[#allocation17_spill] sm:$0xff] }
 0x140   : > { %5977 = vmatprep.mubr.msk.bf16.mxu0 %vm7571_vm3, %v8872_v60  ;;  %6006 = vmatpush3.bf16.msra.mxu0 %v6638_v17  ;;  %v1668_v42 = vsel %vm8758_vm9, %v1657_v29, %v1658_v26  ;;  %v1665_v27 = vsel %vm8758_vm9, %v1660_v16, %v1661_v1  ;;  %v1666_v40 = vsel %vm8758_vm9, %v1659_v6, %v1660_v16  ;;  %vm7688_vm8 = vcmp.gt.s32.totalorder %v1156_v8, 0  ;;  %v6640_v16 = vld [vmem:[%s8707_s3 + $0x170] sm:$0xff]   ;;  %v6642_v2 = vld [vmem:[%s8707_s3 + $0xa8] sm:$0xff]  }
 0x141   : > { %8879 = vst [vmem:[#allocation29_spill] sm:$0xff] %v7651_v35  ;;  %6007 = vmatprep.subr.bf16.mxu0 %v6639_v21  ;;  %v7672_v25 = vpack.c.bf16 %v1667_v9, %v1668_v42  ;;  %6122 = vmatmul.mubr.msk.bf16.gmra.mrb[24].mxu1 %vm7647_vm6, %v8883_v37  ;;  %v7679_v17 = vpack.c.bf16 %v1665_v27, %v1666_v40  ;;  %vm7698_vm10 = vcmp.gt.s32.totalorder %v1170_v61, 0  ;;  %v1042_v11 = vadd.s32 160, %v6986_v59  ;;  %vm7740_vm15 = vmpackc.low %vm6688_vm11, %vm7688_vm8  ;;  %v6643_v9 = vld [vmem:[%s8707_s3 + $0x178] sm:$0xff]   ;;  %v8897_v42 = vld [vmem:[#allocation21_spill] sm:$0xff] }
 0x142   : > { %v7683_v29 = vsel %vm8758_vm9, %v1661_v1, %v1662_v38  ;;  %6125 = vmatprep.mubr.msk.bf16.mxu1 %vm7658_vm7, %v8885_v33  ;;  %6154 = vmatpush3.bf16.msra.mxu1 %v6634_v51  ;;  %v2742_v6 = vsel %vm8758_vm9, %v1662_v38, %v2739_v46  ;;  %v7696_v26 = vsel %vm8758_vm9, %v2739_v46, %v2740_v56  ;;  %v1040_v1 = vadd.s32 144, %v6986_v59  ;;  %vm7752_vm0 = vmpackc.low %vm6688_vm11, %vm7698_vm10  ;;  %v8898_v27 = vld [vmem:[#allocation24_spill] sm:$0xff] }
 0x143   : > { %8882 = vst [vmem:[#allocation25_spill] sm:$0xff] %v7672_v25  ;;  %8884 = vst [vmem:[#allocation12_spill] sm:$0xff] %v7679_v17  ;;  %6155 = vmatprep.subr.bf16.mxu1 %v6637_v15  ;;  %v7707_v51 = vpack.c.bf16 %v2742_v6, %v7683_v29  ;;  %v7712_v44 = vsel %vm8758_vm9, %v2740_v56, %v7078_v54  ;;  %v7723_v8 = vsel %vm8758_vm9, %v1662_v38, %v7122_v34  ;;  %v7774_v40 = vld [vmem:[%s8707_s3 + $0x1c0] sm:$0xff]   ;;  %v6645_v6 = vld [vmem:[%s8707_s3 + $0xb8] sm:$0xff]   ;;  %v8899_v52 = vmov 0 }
 0x144   : > { %8888 = vst [vmem:[#allocation14_spill] sm:$0xff] %v7696_v26  ;;  %6008 = vmatpush3.bf16.msra.mxu0 %v6639_v21  ;;  %v7727_v47 = vpack.c.bf16 %v7396_v13, %v7407_v41  ;;  %v7747_v41 = vsel %vm8758_vm9, %v2740_v56, %v7122_v34  ;;  %v1184_v46 = vand.u32 15, %v1040_v1  ;;  %v6644_v56 = vld [vmem:[%s8707_s3 + $0xb0] sm:$0xff]   ;;  %v1046_v5 = vadd.s32 192, %v6986_v59 }
 0x145   : > { %8891 = vst [vmem:[#allocation28_spill] sm:$0xff] %v7707_v51  ;;  %6009 = vmatprep.subr.bf16.mxu0 %v6641_v0  ;;  %8894 = vst [vmem:[#allocation17_spill] sm:$0xff] %v7747_v41  ;;  %v8901_v1 = vmov 0  ;;  %v1052_v61 = vadd.s32 240, %v6986_v59  ;;  %v1023_v54 = vadd.s32 8, %v6986_v59  ;;  %v1025_v21 = vadd.s32 24, %v6986_v59 }
 0x146   : > { %6156 = vmatpush3.bf16.msra.mxu1 %v6637_v15  ;;  %v1198_v15 = vand.u32 15, %v1042_v11  ;;  %vm1456_vm2 = vcmp.gt.s32.totalorder %v1184_v46, 0  ;;  %v1226_v11 = vand.u32 15, %v1046_v5  ;;  %v8903_v46 = vld [vmem:[#allocation27_spill] sm:$0xff]  ;;  %v8907_v5 = vmov 0 }
 0x147   : > { %5978 = vmatmul.mubr.msk.bf16.gmra.mrb[56].mxu0 %vm7647_vm6, %v8873_v39  ;;  %6157 = vmatprep.subr.bf16.mxu1 %v6640_v16  ;;  %vm7787_vm8 = vmpackc.low %vm6688_vm11, %vm1456_vm2  ;;  %v1027_v28 = vadd.s32 40, %v6986_v59  ;;  %v1079_v41 = vand.u32 15, %v1025_v21  ;;  %v8927_v21 = vpack.c.bf16 %v7438_v43, %v7122_v34 }
 0x148   : > { %5981 = vmatprep.mubr.msk.bf16.mxu0 %vm7658_vm7, %v8883_v37  ;;  %6010 = vmatpush3.bf16.msra.mxu0 %v6641_v0  ;;  %v1044_v0 = vadd.s32 176, %v6986_v59  ;;  %vm1458_vm5 = vcmp.gt.s32.totalorder %v1198_v15, 0  ;;  %v8900_v52 = vsel %vm7787_vm8, 4294967295, %v8899_v52  ;;  %v1048_v15 = vadd.s32 208, %v6986_v59 }
 0x149   : > { %6011 = vmatprep.subr.bf16.mxu0 %v6642_v2  ;;  %6126 = vmatmul.mubr.msk.bf16.gmra.mrb[28].mxu1 %vm7740_vm15, %v8897_v42  ;;  %vm7792_vm10 = vmpackc.low %vm6688_vm11, %vm1458_vm5  ;;  %vm1462_vm5 = vcmp.gt.s32.totalorder %v1226_v11, 0  ;;  %v8909_v11 = vld [vmem:[#allocation33_spill] sm:$0xff] }
 0x14a   : > { %6129 = vmatprep.mubr.msk.bf16.mxu1 %vm7752_vm0, %v8898_v27  ;;  %6158 = vmatpush3.bf16.msra.mxu1 %v6640_v16  ;;  %v8902_v1 = vsel %vm7792_vm10, 4294967295, %v8901_v1  ;;  %v1212_v16 = vand.u32 15, %v1044_v0  ;;  %v8905_v0 = vmov 0  ;;  %vm7823_vm4 = vmpackc.low %vm6688_vm11, %vm1462_vm5 }
 0x14b   : > { %6159 = vmatprep.subr.bf16.mxu1 %v6643_v9  ;;  %v8908_v5 = vsel %vm7823_vm4, 4294967295, %v8907_v5 }
 0x14c   : > { %6012 = vmatpush3.bf16.msra.mxu0 %v6642_v2  ;;  %v7800_v2 = vld [vmem:[%s8707_s3 + $0x100] sm:$0xff]   ;;  %vm1460_vm2 = vcmp.gt.s32.totalorder %v1212_v16, 0 }
 0x14d   : > { %6013 = vmatprep.subr.bf16.mxu0 %v6644_v56  ;;  %vm7818_vm9 = vmpackc.low %vm6688_vm11, %vm1460_vm2 }
 0x14e   : > { %6160 = vmatpush3.bf16.msra.mxu1 %v6643_v9  ;;  %v8904_v9 = vld [vmem:[#allocation31_spill] sm:$0xff]  ;;  %v8906_v0 = vsel %vm7818_vm9, 4294967295, %v8905_v0 }
 0x14f   : > { %5982 = vmatmul.mubr.msk.bf16.gmra.mrb[60].mxu0 %vm7740_vm15, %v8885_v33  ;;  %6193 = vmatprep.subr.bf16.mxu1 %v7774_v40 }
 0x150   : > { %5985 = vmatprep.mubr.msk.bf16.mxu0 %vm7752_vm0, %v8897_v42  ;;  %6014 = vmatpush3.bf16.msra.mxu0 %v6644_v56  ;;  %v1050_v56 = vadd.s32 224, %v6986_v59 }
 0x151   : > { %6015 = vmatprep.subr.bf16.mxu0 %v6645_v6  ;;  %6130 = vmatmul.mubr.msk.bf16.gmra.mrb[32].mxu1 %vm7787_vm8, %v8903_v46 }
 0x152   : > { %6133 = vmatprep.mubr.msk.bf16.mxu1 %vm7792_vm10, %v8904_v9  ;;  %v1254_v16 = vand.u32 15, %v1050_v56  ;;  %v8913_v56 = vmov 0 }
 0x154   : > { %6016 = vmatpush3.bf16.msra.mxu0 %v6645_v6  ;;  %v1240_v6 = vand.u32 15, %v1048_v15  ;;  %vm1466_vm2 = vcmp.gt.s32.totalorder %v1254_v16, 0  ;;  %v8910_v15 = vmov 0  ;;  %v1065_v16 = vand.u32 15, %v1023_v54 }
 0x155   : > { %6049 = vmatprep.subr.bf16.mxu0 %v7800_v2  ;;  %v8917_v54 = vmov 0 }
 0x157   : > { %5986 = vmatmul.mubr.msk.bf16.gmra.mrb[64].mxu0 %vm7787_vm8, %v8898_v27  ;;  %vm7847_vm8 = vmpackc.low %vm6688_vm11, %vm1466_vm2 }
 0x158   : > { %5989 = vmatprep.mubr.msk.bf16.mxu0 %vm7792_vm10, %v8903_v46  ;;  %vm1464_vm10 = vcmp.gt.s32.totalorder %v1240_v6, 0  ;;  %v8914_v56 = vsel %vm7847_vm8, 4294967295, %v8913_v56  ;;  %v1268_v6 = vand.u32 15, %v1052_v61  ;;  %v7862_v61 = vpop.f32.mrb[0].mxu1 }
 0x159   : > { %6134 = vmatmul.mubr.msk.bf16.gmra.mrb[36].mxu1 %vm7818_vm9, %v8909_v11  ;;  %vm7842_vm5 = vmpackc.low %vm6688_vm11, %vm1464_vm10  ;;  %8915 = vst [vmem:[#allocation21_spill] sm:$0xff] %v8914_v56  ;;  %vm1471_vm10 = vcmp.lt.s32.totalorder %v1065_v16, 15  ;;  %v8921_v16 = vmov 0  ;;  %v1031_v56 = vadd.s32 72, %v6986_v59 }
 0x15a   : > { %6137 = vmatprep.mubr.msk.bf16.mxu1 %vm7823_vm4, %v7394_v12  ;;  %v8911_v15 = vsel %vm7842_vm5, 4294967295, %v8910_v15  ;;  %8916 = vst [vmem:[#allocation24_spill] sm:$0xff] %v7862_v61  ;;  %v1093_v61 = vand.u32 15, %v1027_v28 }
 0x15b   : > { %8912 = vst [vmem:[#allocation19_spill] sm:$0xff] %v8911_v15 }
 0x15f   : > { %5990 = vmatmul.mubr.msk.bf16.gmra.mrb[68].mxu0 %vm7818_vm9, %v8904_v9  ;;  %vm7875_vm9 = vmpackc.low %vm1471_vm10, %vm6688_vm11  ;;  %vm1475_vm10 = vcmp.lt.s32.totalorder %v1093_v61, 15 }
 0x160   : > { %5993 = vmatprep.mubr.msk.bf16.mxu0 %vm7823_vm4, %v8909_v11  ;;  %vm1468_vm4 = vcmp.gt.s32.totalorder %v1268_v6, 0  ;;  %v7872_v6 = vpop.f32.mrb[1].mxu1  ;;  %v8922_v16 = vsel %vm7875_vm9, 4294967295, %v8921_v16  ;;  %v9013_v31 = vld [vmem:[#allocation21_spill] sm:$0xff] }
 0x161   : > { %6138 = vmatmul.mubr.msk.bf16.gmra.mrb[40].mxu1 %vm7842_vm5, %v7416_v63  ;;  %vm7868_vm2 = vmpackc.low %vm6688_vm11, %vm1468_vm4  ;;  %8920 = vst [vmem:[#allocation31_spill] sm:$0xff] %v7872_v6  ;;  %v7879_v50 = vpop.f32.mrb[2].mxu1  ;;  %vm1473_vm4 = vcmp.lt.s32.totalorder %v1079_v41, 15  ;;  %v1029_v6 = vadd.s32 56, %v6986_v59  ;;  %v8928_v41 = vmov 0 }
 0x162   : > { %6141 = vmatprep.mubr.msk.bf16.mxu1 %vm7847_vm8, %v7429_v58  ;;  %v8918_v54 = vsel %vm7868_vm2, 4294967295, %v8917_v54  ;;  %8923 = vst [vmem:[#allocation33_spill] sm:$0xff] %v8922_v16  ;;  %8924 = vst [vmem:[#allocation35_spill] sm:$0xff] %v7879_v50  ;;  %v7881_v15 = vpop.f32.mrb[3].mxu1  ;;  %v8931_v50 = vmov 0  ;;  %v8936_v16 = vld [vmem:[#allocation8_spill] sm:$0xff] }
 0x163   : > { %8919 = vst [vmem:[#allocation27_spill] sm:$0xff] %v8918_v54  ;;  %8925 = vst [vmem:[#allocation36_spill] sm:$0xff] %v7881_v15  ;;  %v7894_v28 = vpop.f32.mrb[4].mxu1  ;;  %v1107_v43 = vand.u32 15, %v1029_v6  ;;  %v1033_v6 = vadd.s32 88, %v6986_v59  ;;  %v9011_v20 = vld [vmem:[#allocation19_spill] sm:$0xff] }
 0x164   : > { %8926 = vst [vmem:[#allocation37_spill] sm:$0xff] %v7894_v28  ;;  %v7906_v61 = vpop.f32.mrb[5].mxu1  ;;  %v6647_v28 = vld [vmem:[%s8707_s3 + $0x1c8] sm:$0xff]  }
 0x165   : > { %8930 = vst [vmem:[#allocation38_spill] sm:$0xff] %v7906_v61  ;;  %v7916_v15 = vpop.f32.mrb[6].mxu1 }
 0x166   : > { %8934 = vst [vmem:[#allocation40_spill] sm:$0xff] %v7916_v15  ;;  %v7918_v34 = vpop.f32.mrb[7].mxu1 }
 0x167   : > { %5994 = vmatmul.mubr.msk.bf16.gmra.mrb[72].mxu0 %vm7842_vm5, %v7394_v12  ;;  %vm7909_vm5 = vmpackc.low %vm1475_vm10, %vm6688_vm11  ;;  %8935 = vst [vmem:[#allocation41_spill] sm:$0xff] %v7918_v34  ;;  %v7927_v61 = vpop.f32.mrb[8].mxu1  ;;  %v1035_v34 = vadd.s32 104, %v6986_v59 }
 0x168   : > { %5997 = vmatprep.mubr.msk.bf16.mxu0 %vm7847_vm8, %v7416_v63  ;;  %vm7902_vm8 = vmpackc.low %vm1473_vm4, %vm6688_vm11  ;;  %v8932_v50 = vsel %vm7909_vm5, 4294967295, %v8931_v50  ;;  %8937 = vst [vmem:[#allocation8_spill] sm:$0xff] %v7927_v61  ;;  %vm1477_vm4 = vcmp.lt.s32.totalorder %v1107_v43, 15  ;;  %v7933_v15 = vpop.f32.mrb[9].mxu1  ;;  %v8943_v61 = vmov 0 }
 0x169   : > { %6142 = vmatmul.mubr.msk.bf16.gmra.mrb[44].mxu1 %vm7868_vm2, %v7470_v18  ;;  %v8929_v41 = vsel %vm7902_vm8, 4294967295, %v8928_v41  ;;  %8933 = vst [vmem:[#allocation39_spill] sm:$0xff] %v8932_v50  ;;  %8938 = vst [vmem:[#allocation42_spill] sm:$0xff] %v7933_v15  ;;  %v7939_v54 = vpop.f32.mrb[10].mxu1  ;;  %v1149_v15 = vand.u32 15, %v1035_v34  ;;  %v1037_v34 = vadd.s32 120, %v6986_v59 }
 0x16a   : > { %6161 = vmatprep.mubr.msk.bf16.mxu1 %vm7875_vm9, %v7432_v53  ;;  %8939 = vst [vmem:[#allocation43_spill] sm:$0xff] %v7939_v54  ;;  %v7944_v43 = vpop.f32.mrb[11].mxu1  ;;  %v1135_v54 = vand.u32 15, %v1033_v6  ;;  %v1039_v50 = vadd.s32 136, %v6986_v59 }
 0x16b   : > { %8940 = vst [vmem:[#allocation44_spill] sm:$0xff] %v7944_v43  ;;  %v6654_v43 = vld [vmem:[%s8707_s3 + $0x110] sm:$0xff]  }
 0x16f   : > { %5998 = vmatmul.mubr.msk.bf16.gmra.mrb[76].mxu0 %vm7868_vm2, %v7429_v58 }
 0x170   : > { %6017 = vmatprep.mubr.msk.bf16.mxu0 %vm7875_vm9, %v8927_v21  ;;  %v1121_v21 = vand.u32 15, %v1031_v56  ;;  %v6648_v56 = vld [vmem:[%s8707_s3 + $0x1d0] sm:$0xff]   ;;  %vm7950_vm9 = vmpackc.low %vm1477_vm4, %vm6688_vm11  ;;  %vm1481_vm4 = vcmp.lt.s32.totalorder %v1135_v54, 15 }
 0x171   : > { %6162 = vmatmul.mubr.msk.bf16.vlgmr.msra.gmra.mrb[16].mxu1 %vm7902_vm8, %v8936_v16 }
 0x172   : > { %6194 = vmatpush3.bf16.msra.mxu1 %v7774_v40  ;;  %6165 = vmatprep.mubr.msk.bf16.mxu1 %vm7909_vm5, %v7497_v30  ;;  %vm1479_vm10 = vcmp.lt.s32.totalorder %v1121_v21, 15  ;;  %v6652_v40 = vld [vmem:[%s8707_s3 + $0x108] sm:$0xff]   ;;  %v8941_v21 = vmov 0 }
 0x173   : > { %6195 = vmatprep.subr.bf16.mxu1 %v6647_v28  ;;  %v8942_v21 = vsel %vm7950_vm9, 4294967295, %v8941_v21  ;;  %vm7955_vm2 = vmpackc.low %vm1479_vm10, %vm6688_vm11  ;;  %vm1483_vm10 = vcmp.lt.s32.totalorder %v1149_v15, 15  ;;  %v8950_v15 = vmov 0 }
 0x174   : > { %v8944_v61 = vsel %vm7955_vm2, 4294967295, %v8943_v61 }
 0x175   : > { %8945 = vst [vmem:[#allocation45_spill] sm:$0xff] %v8944_v61  ;;  %v6657_v61 = vld [vmem:[%s8707_s3 + $0x120] sm:$0xff]  }
 0x176   : > { %6196 = vmatpush3.bf16.msra.mxu1 %v6647_v28  ;;  %v7972_v28 = vpop.f32.mrb[12].mxu1 }
 0x177   : > { %6018 = vmatmul.mubr.msk.bf16.vlgmr.msra.gmra.mrb[48].mxu0 %vm7902_vm8, %v7432_v53  ;;  %6197 = vmatprep.subr.bf16.mxu1 %v6648_v56  ;;  %v6649_v53 = vld [vmem:[%s8707_s3 + $0x1d8] sm:$0xff]   ;;  %8946 = vst [vmem:[#allocation46_spill] sm:$0xff] %v7972_v28  ;;  %v7978_v6 = vpop.f32.mrb[13].mxu1  ;;  %vm8000_vm8 = vmpackc.low %vm1483_vm10, %vm6688_vm11 }
 0x178   : > { %6021 = vmatprep.mubr.msk.bf16.mxu0 %vm7909_vm5, %v8936_v16  ;;  %6050 = vmatpush3.bf16.msra.mxu0 %v7800_v2  ;;  %v6650_v2 = vld [vmem:[%s8707_s3 + $0x1e0] sm:$0xff]   ;;  %8947 = vst [vmem:[#allocation47_spill] sm:$0xff] %v7978_v6  ;;  %v7984_v28 = vpop.f32.mrb[14].mxu1  ;;  %vm7995_vm5 = vmpackc.low %vm1481_vm4, %vm6688_vm11  ;;  %v6653_v6 = vld [vmem:[%s8707_s3 + $0x1e8] sm:$0xff]  }
 0x179   : > { %6051 = vmatprep.subr.bf16.mxu0 %v6652_v40  ;;  %6166 = vmatmul.mubr.msk.bf16.gmra.mrb[20].mxu1 %vm7950_vm9, %v7499_v48  ;;  %8948 = vst [vmem:[#allocation48_spill] sm:$0xff] %v7984_v28  ;;  %v7989_v54 = vpop.f32.mrb[15].mxu1  ;;  %v8951_v15 = vsel %vm7995_vm5, 4294967295, %v8950_v15  ;;  %v1163_v28 = vand.u32 15, %v1037_v34  ;;  %v6658_v34 = vld [vmem:[%s8707_s3 + $0x128] sm:$0xff]  }
 0x17a   : > { %6169 = vmatprep.mubr.msk.bf16.mxu1 %vm7955_vm2, %v7522_v4  ;;  %6198 = vmatpush3.bf16.msra.mxu1 %v6648_v56  ;;  %v6655_v56 = vld [vmem:[%s8707_s3 + $0x118] sm:$0xff]   ;;  %8949 = vst [vmem:[#allocation49_spill] sm:$0xff] %v7989_v54  ;;  %8952 = vst [vmem:[#allocation50_spill] sm:$0xff] %v8951_v15  ;;  %v1177_v54 = vand.u32 15, %v1039_v50  ;;  %v6656_v50 = vld [vmem:[%s8707_s3 + $0x1f0] sm:$0xff]  }
 0x17b   : > { %6199 = vmatprep.subr.bf16.mxu1 %v6649_v53  ;;  %vm1485_vm4 = vcmp.lt.s32.totalorder %v1163_v28, 15  ;;  %v8956_v28 = vmov 0  ;;  %v6660_v15 = vld [vmem:[%s8707_s3 + $0x130] sm:$0xff]  }
 0x17c   : > { %6052 = vmatpush3.bf16.msra.mxu0 %v6652_v40  ;;  %v8953_v40 = vmov 0  ;;  %vm1487_vm10 = vcmp.lt.s32.totalorder %v1177_v54, 15  ;;  %v6659_v54 = vld [vmem:[%s8707_s3 + $0x1f8] sm:$0xff]  }
 0x17d   : > { %6053 = vmatprep.subr.bf16.mxu0 %v6654_v43  ;;  %v8954_v40 = vsel %vm8000_vm8, 4294967295, %v8953_v40 }
 0x17e   : > { %6200 = vmatpush3.bf16.msra.mxu1 %v6649_v53  ;;  %8955 = vst [vmem:[#allocation51_spill] sm:$0xff] %v8954_v40  ;;  %v1041_v53 = vadd.s32 152, %v6986_v59 }
 0x17f   : > { %6022 = vmatmul.mubr.msk.bf16.gmra.mrb[52].mxu0 %vm7950_vm9, %v7497_v30  ;;  %6201 = vmatprep.subr.bf16.mxu1 %v6650_v2  ;;  %vm8036_vm9 = vmpackc.low %vm1487_vm10, %vm6688_vm11 }
 0x180   : > { %6025 = vmatprep.mubr.msk.bf16.mxu0 %vm7955_vm2, %v7499_v48  ;;  %6054 = vmatpush3.bf16.msra.mxu0 %v6654_v43  ;;  %v1043_v43 = vadd.s32 168, %v6986_v59  ;;  %vm8031_vm2 = vmpackc.low %vm1485_vm4, %vm6688_vm11 }
 0x181   : > { %6055 = vmatprep.subr.bf16.mxu0 %v6655_v56  ;;  %6170 = vmatmul.mubr.msk.bf16.gmra.mrb[24].mxu1 %vm7995_vm5, %v7545_v14  ;;  %v8957_v28 = vsel %vm8031_vm2, 4294967295, %v8956_v28 }
 0x182   : > { %6173 = vmatprep.mubr.msk.bf16.mxu1 %vm8000_vm8, %v7579_v45  ;;  %6202 = vmatpush3.bf16.msra.mxu1 %v6650_v2  ;;  %v8958_v2 = vmov 0  ;;  %v1205_v40 = vand.u32 15, %v1043_v43  ;;  %v6661_v43 = vld [vmem:[%s8707_s3 + $0x138] sm:$0xff]  }
 0x183   : > { %6203 = vmatprep.subr.bf16.mxu1 %v6653_v6  ;;  %v8959_v2 = vsel %vm8036_vm9, 4294967295, %v8958_v2 }
 0x184   : > { %6056 = vmatpush3.bf16.msra.mxu0 %v6655_v56  ;;  %8960 = vst [vmem:[#allocation52_spill] sm:$0xff] %v8959_v2  ;;  %v1191_v56 = vand.u32 15, %v1041_v53  ;;  %vm1491_vm10 = vcmp.lt.s32.totalorder %v1205_v40, 15  ;;  %v1047_v53 = vadd.s32 200, %v6986_v59  ;;  %v8964_v40 = vmov 0 }
 0x185   : > { %6057 = vmatprep.subr.bf16.mxu0 %v6657_v61  ;;  %v1051_v2 = vadd.s32 232, %v6986_v59  ;;  %v9029_v32 = vld [vmem:[#allocation51_spill] sm:$0xff] }
 0x186   : > { %6204 = vmatpush3.bf16.msra.mxu1 %v6653_v6  ;;  %vm1489_vm4 = vcmp.lt.s32.totalorder %v1191_v56, 15  ;;  %v6662_v6 = vld [vmem:[%s8707_s3 + $0x180] sm:$0xff]   ;;  %v1233_v56 = vand.u32 15, %v1047_v53 }
 0x187   : > { %6026 = vmatmul.mubr.msk.bf16.gmra.mrb[56].mxu0 %vm7995_vm5, %v7522_v4  ;;  %6205 = vmatprep.subr.bf16.mxu1 %v6656_v50  ;;  %vm8072_vm5 = vmpackc.low %vm1491_vm10, %vm6688_vm11 }
 0x188   : > { %6029 = vmatprep.mubr.msk.bf16.mxu0 %vm8000_vm8, %v7545_v14  ;;  %6058 = vmatpush3.bf16.msra.mxu0 %v6657_v61  ;;  %v1045_v61 = vadd.s32 184, %v6986_v59  ;;  %vm8067_vm8 = vmpackc.low %vm1489_vm4, %vm6688_vm11  ;;  %v8965_v40 = vsel %vm8072_vm5, 4294967295, %v8964_v40  ;;  %vm1495_vm10 = vcmp.lt.s32.totalorder %v1233_v56, 15  ;;  %v1053_v56 = vadd.s32 248, %v6986_v59 }
 0x189   : > { %6059 = vmatprep.subr.bf16.mxu0 %v6658_v34  ;;  %6174 = vmatmul.mubr.msk.bf16.gmra.mrb[28].mxu1 %vm8031_vm2, %v7588_v49  ;;  %8966 = vst [vmem:[#allocation54_spill] sm:$0xff] %v8965_v40 }
 0x18a   : > { %6177 = vmatprep.mubr.msk.bf16.mxu1 %vm8036_vm9, %v7606_v55  ;;  %6206 = vmatpush3.bf16.msra.mxu1 %v6656_v50  ;;  %v8961_v50 = vmov 0 }
 0x18b   : > { %6207 = vmatprep.subr.bf16.mxu1 %v6659_v54  ;;  %v8962_v50 = vsel %vm8067_vm8, 4294967295, %v8961_v50  ;;  %v9032_v13 = vld [vmem:[#allocation52_spill] sm:$0xff] }
 0x18c   : > { %6060 = vmatpush3.bf16.msra.mxu0 %v6658_v34  ;;  %8963 = vst [vmem:[#allocation53_spill] sm:$0xff] %v8962_v50  ;;  %v1219_v34 = vand.u32 15, %v1045_v61  ;;  %v8970_v61 = vmov 0  ;;  %v8990_v50 = vld [vmem:[#allocation9_spill] sm:$0xff] }
 0x18d   : > { %6061 = vmatprep.subr.bf16.mxu0 %v6660_v15 }
 0x18e   : > { %6208 = vmatpush3.bf16.msra.mxu1 %v6659_v54  ;;  %vm1493_vm4 = vcmp.lt.s32.totalorder %v1219_v34, 15  ;;  %v1049_v54 = vadd.s32 216, %v6986_v59  ;;  %v8106_v34 = vpop.f32.mrb[32].mxu0 }
 0x18f   : > { %6030 = vmatmul.mubr.msk.bf16.gmra.mrb[60].mxu0 %vm8031_vm2, %v7579_v45  ;;  %6241 = vmatprep.subr.bf16.mxu1 %v6662_v6  ;;  %vm8096_vm2 = vmpackc.low %vm1495_vm10, %vm6688_vm11 }
 0x190   : > { %6033 = vmatprep.mubr.msk.bf16.mxu0 %vm8036_vm9, %v7588_v49  ;;  %6062 = vmatpush3.bf16.msra.mxu0 %v6660_v15  ;;  %vm8091_vm9 = vmpackc.low %vm1493_vm4, %vm6688_vm11  ;;  %v8967_v15 = vmov 0  ;;  %v8971_v61 = vsel %vm8096_vm2, 4294967295, %v8970_v61  ;;  %v1247_v53 = vand.u32 15, %v1049_v54  ;;  %v8976_v54 = vmov 0 }
 0x191   : > { %6063 = vmatprep.subr.bf16.mxu0 %v6661_v43  ;;  %6178 = vmatmul.mubr.msk.bf16.gmra.mrb[32].mxu1 %vm8067_vm8, %v7615_v24  ;;  %v8968_v15 = vsel %vm8091_vm9, 4294967295, %v8967_v15  ;;  %8972 = vst [vmem:[#allocation56_spill] sm:$0xff] %v8971_v61 }
 0x192   : > { %6181 = vmatprep.mubr.msk.bf16.mxu1 %vm8072_vm5, %v7635_v23  ;;  %8969 = vst [vmem:[#allocation55_spill] sm:$0xff] %v8968_v15  ;;  %vm1497_vm4 = vcmp.lt.s32.totalorder %v1247_v53, 15  ;;  %v1275_v53 = vand.u32 15, %v1053_v56  ;;  %v8980_v56 = vmov 0 }
 0x193   : > { %vm8116_vm10 = vmpackc.low %vm1497_vm4, %vm6688_vm11 }
 0x194   : > { %6064 = vmatpush3.bf16.msra.mxu0 %v6661_v43  ;;  %v1261_v43 = vand.u32 15, %v1051_v2  ;;  %v8973_v2 = vmov 0  ;;  %vm1501_vm4 = vcmp.lt.s32.totalorder %v1275_v53, 15  ;;  %v8983_v53 = vpack.c.bf16 %v7712_v44, %v7696_v26  ;;  %v8987_v44 = vld [vmem:[#allocation4_spill] sm:$0xff]  ;;  %v8988_v26 = vld [vmem:[#allocation7_spill] sm:$0xff] }
 0x195   : > { %v8974_v2 = vsel %vm8116_vm10, 4294967295, %v8973_v2 }
 0x196   : > { %8975 = vst [vmem:[#allocation57_spill] sm:$0xff] %v8974_v2 }
 0x197   : > { %6034 = vmatmul.mubr.msk.bf16.gmra.mrb[64].mxu0 %vm8067_vm8, %v7606_v55 }
 0x198   : > { %6037 = vmatprep.mubr.msk.bf16.mxu0 %vm8072_vm5, %v7615_v24  ;;  %vm1499_vm5 = vcmp.lt.s32.totalorder %v1261_v43, 15  ;;  %v8128_v43 = vpop.f32.mrb[33].mxu0 }
 0x199   : > { %6182 = vmatmul.mubr.msk.bf16.gmra.mrb[36].mxu1 %vm8091_vm9, %v7651_v35  ;;  %vm8121_vm8 = vmpackc.low %vm1499_vm5, %vm6688_vm11  ;;  %v8133_v61 = vpop.f32.mrb[34].mxu0 }
 0x19a   : > { %6185 = vmatprep.mubr.msk.bf16.mxu1 %vm8096_vm2, %v7672_v25  ;;  %v8977_v54 = vsel %vm8121_vm8, 4294967295, %v8976_v54  ;;  %v8135_v15 = vpop.f32.mrb[35].mxu0  ;;  %vm8146_vm5 = vmpackc.low %vm1501_vm4, %vm6688_vm11  ;;  %vm9005_vm11 = vcmp.lt.s32.totalorder %v6986_v59, 1  ;;  %vm9021_vm4 = vnez %v8929_v41 }
 0x19b   : > { %8978 = vst [vmem:[#allocation58_spill] sm:$0xff] %v8977_v54  ;;  %v8137_v40 = vpop.f32.mrb[36].mxu0  ;;  %v8981_v56 = vsel %vm8146_vm5, 4294967295, %v8980_v56 }
 0x19c   : > { %8979 = vst [vmem:[#allocation59_spill] sm:$0xff] %v8137_v40  ;;  %8982 = vst [vmem:[#allocation60_spill] sm:$0xff] %v8981_v56 }
 0x19f   : > { %6038 = vmatmul.mubr.msk.bf16.gmra.mrb[68].mxu0 %vm8091_vm9, %v7635_v23 }
 0x1a0   : > { %6041 = vmatprep.mubr.msk.bf16.mxu0 %vm8096_vm2, %v7651_v35  ;;  %v8984_v35 = vld [vmem:[#allocation6_spill] sm:$0xff] }
 0x1a1   : > { %6186 = vmatmul.mubr.msk.bf16.gmra.mrb[40].mxu1 %vm8116_vm10, %v7679_v17 }
 0x1a2   : > { %6189 = vmatprep.mubr.msk.bf16.mxu1 %vm8121_vm8, %v7707_v51  ;;  %v8155_v51 = vpop.f32.mrb[37].mxu0 }
 0x1a3   : > { %v8158_v2 = vpop.f32.mrb[38].mxu0 }
 0x1a7   : > { %6042 = vmatmul.mubr.msk.bf16.gmra.mrb[72].mxu0 %vm8116_vm10, %v7672_v25  ;;  %v8160_v25 = vpop.f32.mrb[39].mxu0 }
 0x1a8   : > { %6045 = vmatprep.mubr.msk.bf16.mxu0 %vm8121_vm8, %v7679_v17  ;;  %v8162_v54 = vpop.f32.mrb[40].mxu0  ;;  %v8986_v17 = vpack.c.bf16 %v7723_v8, %v7683_v29 }
 0x1a9   : > { %6190 = vmatmul.mubr.msk.bf16.gmra.mrb[44].mxu1 %vm8146_vm5, %v8983_v53  ;;  %8985 = vst [vmem:[#allocation6_spill] sm:$0xff] %v8162_v54  ;;  %v6663_v53 = vld [vmem:[%s8707_s3 + $0x188] sm:$0xff]   ;;  %v8174_v40 = vpop.f32.mrb[41].mxu0 }
 0x1aa   : > { %6209 = vmatprep.mubr.bf16.mxu1 %v8984_v35  ;;  %8989 = vst [vmem:[#allocation4_spill] sm:$0xff] %v8174_v40  ;;  %v8177_v54 = vpop.f32.mrb[42].mxu0 }
 0x1ab   : > { %8991 = vst [vmem:[#allocation7_spill] sm:$0xff] %v8177_v54  ;;  %v8182_v29 = vpop.f32.mrb[43].mxu0  ;;  %v8994_v54 = vld [vmem:[#allocation13_spill] sm:$0xff] }
 0x1ac   : > { %v8184_v8 = vpop.f32.mrb[44].mxu0 }
 0x1ad   : > { %8992 = vst [vmem:[#allocation9_spill] sm:$0xff] %v8184_v8  ;;  %v8192_v56 = vpop.f32.mrb[45].mxu0  ;;  %v8997_v8 = vld [vmem:[#allocation16_spill] sm:$0xff] }
 0x1ae   : > { %v8195_v40 = vpop.f32.mrb[46].mxu0 }
 0x1af   : > { %6046 = vmatmul.mubr.msk.bf16.gmra.mrb[76].mxu0 %vm8146_vm5, %v8986_v17  ;;  %v6664_v17 = vld [vmem:[%s8707_s3 + $0x190] sm:$0xff]  }
 0x1b0   : > { %6065 = vmatprep.mubr.bf16.mxu0 %v8987_v44  ;;  %v8993_v44 = vld [vmem:[#allocation11_spill] sm:$0xff] }
 0x1b1   : > { %6210 = vmatmul.mubr.bf16.vlgmr.msra.gmra.mrb[16].mxu1 %v8988_v26  ;;  %8995 = vst [vmem:[#allocation11_spill] sm:$0xff] %v8195_v40  ;;  %v6668_v40 = vld [vmem:[%s8707_s3 + $0x1b0] sm:$0xff]  }
 0x1b2   : > { %6242 = vmatpush3.bf16.msra.mxu1 %v6662_v6  ;;  %6213 = vmatprep.mubr.bf16.mxu1 %v8990_v50  ;;  %v6665_v6 = vld [vmem:[%s8707_s3 + $0x198] sm:$0xff]  }
 0x1b3   : > { %6243 = vmatprep.subr.bf16.mxu1 %v6663_v53 }
 0x1b6   : > { %6244 = vmatpush3.bf16.msra.mxu1 %v6663_v53  ;;  %v6667_v53 = vld [vmem:[%s8707_s3 + $0x1a8] sm:$0xff]  }
 0x1b7   : > { %6066 = vmatmul.mubr.bf16.vlgmr.msra.gmra.mrb[80].mxu0 %v8984_v35  ;;  %6245 = vmatprep.subr.bf16.mxu1 %v6664_v17  ;;  %v6666_v35 = vld [vmem:[%s8707_s3 + $0x1a0] sm:$0xff]  }
 0x1b8   : > { %6069 = vmatprep.mubr.bf16.mxu0 %v8988_v26  ;;  %v8200_v26 = vpop.f32.mrb[47].mxu0 }
 0x1b9   : > { %6214 = vmatmul.mubr.bf16.gmra.mrb[20].mxu1 %v8993_v44 }
 0x1ba   : > { %6217 = vmatprep.mubr.bf16.mxu1 %v8994_v54  ;;  %6246 = vmatpush3.bf16.msra.mxu1 %v6664_v17  ;;  %v8996_v17 = vld [vmem:[#allocation15_spill] sm:$0xff] }
 0x1bb   : > { %6247 = vmatprep.subr.bf16.mxu1 %v6665_v6 }
 0x1be   : > { %6248 = vmatpush3.bf16.msra.mxu1 %v6665_v6  ;;  %v8998_v6 = vld [vmem:[#allocation18_spill] sm:$0xff] }
 0x1bf   : > { %6070 = vmatmul.mubr.bf16.gmra.mrb[84].mxu0 %v8990_v50  ;;  %6249 = vmatprep.subr.bf16.mxu1 %v6666_v35  ;;  %v6669_v50 = vld [vmem:[%s8707_s3 + $0x1b8] sm:$0xff]  }
 0x1c0   : > { %6073 = vmatprep.mubr.bf16.mxu0 %v8993_v44  ;;  %v8999_v44 = vld [vmem:[#allocation20_spill] sm:$0xff] }
 0x1c1   : > { %6218 = vmatmul.mubr.bf16.gmra.mrb[24].mxu1 %v8996_v17 }
 0x1c2   : > { %6221 = vmatprep.mubr.bf16.mxu1 %v8997_v8  ;;  %6250 = vmatpush3.bf16.msra.mxu1 %v6666_v35  ;;  %v6670_v35 = vld [vmem:[%s8707_s3 + $0x200] sm:$0xff]  }
 0x1c3   : > { %6251 = vmatprep.subr.bf16.mxu1 %v6667_v53 }
 0x1c6   : > { %6252 = vmatpush3.bf16.msra.mxu1 %v6667_v53  ;;  %v9001_v53 = vld [vmem:[#allocation26_spill] sm:$0xff] }
 0x1c7   : > { %6074 = vmatmul.mubr.bf16.gmra.mrb[88].mxu0 %v8994_v54  ;;  %6253 = vmatprep.subr.bf16.mxu1 %v6668_v40  ;;  %v9000_v54 = vld [vmem:[#allocation23_spill] sm:$0xff] }
 0x1c8   : > { %6077 = vmatprep.mubr.bf16.mxu0 %v8996_v17  ;;  %v9003_v17 = vld [vmem:[#allocation32_spill] sm:$0xff] }
 0x1c9   : > { %6222 = vmatmul.mubr.bf16.gmra.mrb[28].mxu1 %v8998_v6 }
 0x1ca   : > { %6225 = vmatprep.mubr.bf16.mxu1 %v8999_v44  ;;  %6254 = vmatpush3.bf16.msra.mxu1 %v6668_v40  ;;  %v9002_v40 = vld [vmem:[#allocation30_spill] sm:$0xff] }
 0x1cb   : > { %6255 = vmatprep.subr.bf16.mxu1 %v6669_v50 }
 0x1ce   : > { %6256 = vmatpush3.bf16.msra.mxu1 %v6669_v50 }
 0x1cf   : > { %6078 = vmatmul.mubr.bf16.gmra.mrb[92].mxu0 %v8997_v8  ;;  %6289 = vmatprep.subr.bf16.mxu1 %v6670_v35  ;;  %v9004_v8 = vld [vmem:[#allocation22_spill] sm:$0xff] }
 0x1d0   : > { %6081 = vmatprep.mubr.bf16.mxu0 %v8998_v6  ;;  %v3755_v50 = vsel %vm9005_vm11, %v6992_v3, %v9004_v8  ;;  %v9042_v8 = vld [vmem:[#allocation25_spill] sm:$0xff] }
 0x1d1   : > { %6226 = vmatmul.mubr.bf16.gmra.mrb[32].mxu1 %v9000_v54  ;;  %v5400_v6 = vpack.c.bf16 %v7286_v36, %v3755_v50  ;;  %v6672_v36 = vld [vmem:[%s8707_s3 + $0x210] sm:$0xff]  }
 0x1d2   : > { %6229 = vmatprep.mubr.bf16.mxu1 %v9001_v53 }
 0x1d7   : > { %6082 = vmatmul.mubr.bf16.gmra.mrb[96].mxu0 %v8999_v44  ;;  %v9006_v44 = vmov 0.0|0.0  }
 0x1d8   : > { %6085 = vmatprep.mubr.bf16.mxu0 %v9000_v54  ;;  %v6671_v54 = vld [vmem:[%s8707_s3 + $0x208] sm:$0xff]  }
 0x1d9   : > { %6230 = vmatmul.mubr.bf16.gmra.mrb[36].mxu1 %v9002_v40 }
 0x1da   : > { %6233 = vmatprep.mubr.bf16.mxu1 %v9003_v17 }
 0x1df   : > { %6086 = vmatmul.mubr.bf16.gmra.mrb[100].mxu0 %v9001_v53 }
 0x1e0   : > { %6089 = vmatprep.mubr.bf16.mxu0 %v9002_v40 }
 0x1e1   : > { %6234 = vmatmul.mubr.bf16.gmra.mrb[40].mxu1 %v7389_v19 }
 0x1e2   : > { %6237 = vmatprep.mubr.bf16.mxu1 %v7727_v47 }
 0x1e7   : > { %6090 = vmatmul.mubr.bf16.gmra.mrb[104].mxu0 %v9003_v17 }
 0x1e8   : > { %6093 = vmatprep.mubr.bf16.mxu0 %v7389_v19  ;;  %v6673_v19 = vld [vmem:[%s8707_s3 + $0x218] sm:$0xff]  }
 0x1e9   : > { %6238 = vmatmul.mubr.bf16.gmra.mrb[44].mxu1 %v9006_v44 }
 0x1ea   : > { %6257 = vmatprep.mubr.msk.bf16.mxu1 %vm7412_vm12, %v5400_v6  ;;  %vm9007_vm12 = vnez %v8900_v52  ;;  %v9044_v6 = vld [vmem:[#allocation6_spill] sm:$0xff] }
 0x1ef   : > { %6094 = vmatmul.mubr.bf16.gmra.mrb[108].mxu0 %v7727_v47 }
 0x1f1   : > { %6258 = vmatmul.mubr.msk.bf16.vlgmr.msra.gmra.mrb[16].mxu1 %vm7446_vm13, %v7087_v62  ;;  %v6674_v62 = vld [vmem:[%s8707_s3 + $0x220] sm:$0xff]   ;;  %vm9008_vm13 = vnez %v8902_v1 }
 0x1f2   : > { %6290 = vmatpush3.bf16.msra.mxu1 %v6670_v35  ;;  %6261 = vmatprep.mubr.msk.bf16.mxu1 %vm7463_vm14, %v8872_v60  ;;  %vm9009_vm14 = vnez %v8906_v0  ;;  %v9015_v60 = vld [vmem:[#allocation34_spill] sm:$0xff]  ;;  %v9041_v35 = vld [vmem:[#allocation7_spill] sm:$0xff] }
 0x1f3   : > { %6291 = vmatprep.subr.bf16.mxu1 %v6671_v54 }
 0x1f6   : > { %6292 = vmatpush3.bf16.msra.mxu1 %v6671_v54 }
 0x1f7   : > { %6293 = vmatprep.subr.bf16.mxu1 %v6672_v36 }
 0x1f9   : > { %6262 = vmatmul.mubr.msk.bf16.gmra.mrb[20].mxu1 %vm7555_vm1, %v8873_v39  ;;  %vm9010_vm1 = vnez %v8908_v5 }
 0x1fa   : > { %6265 = vmatprep.mubr.msk.bf16.mxu1 %vm7571_vm3, %v8883_v37  ;;  %6294 = vmatpush3.bf16.msra.mxu1 %v6672_v36  ;;  %vm9012_vm3 = vnez %v9011_v20  ;;  %v9045_v36 = vld [vmem:[#allocation12_spill] sm:$0xff] }
 0x1fb   : > { %6295 = vmatprep.subr.bf16.mxu1 %v6673_v19 }
 0x1fe   : > { %6296 = vmatpush3.bf16.msra.mxu1 %v6673_v19 }
 0x1ff   : > { %6297 = vmatprep.subr.bf16.mxu1 %v6674_v62 }
 0x201   : > { %6266 = vmatmul.mubr.msk.bf16.gmra.mrb[24].mxu1 %vm7647_vm6, %v8885_v33  ;;  %vm9014_vm6 = vnez %v9013_v31 }
 0x202   : > { %6269 = vmatprep.mubr.msk.bf16.mxu1 %vm7658_vm7, %v8897_v42  ;;  %6298 = vmatpush3.bf16.msra.mxu1 %v6674_v62  ;;  %vm9016_vm7 = vmmov %vm9005_vm11 }
 0x203   : > { %6299 = vmatprep.subr.bf16.mxu1 %v6675_v10  ;;  %v3725_v39 = vsel %vm9016_vm7, %v9015_v60, %v6992_v3  ;;  %v9047_v60 = vld [vmem:[#allocation11_spill] sm:$0xff] }
 0x204   : > { %v5445_v22 = vpack.c.bf16 %v6992_v3, %v3725_v39  ;;  %v9025_v3 = vld [vmem:[#allocation45_spill] sm:$0xff] }
 0x206   : > { %6300 = vmatpush3.bf16.msra.mxu1 %v6675_v10 }
 0x207   : > { %6301 = vmatprep.subr.bf16.mxu1 %v6676_v7 }
 0x209   : > { %6270 = vmatmul.mubr.msk.bf16.gmra.mrb[28].mxu1 %vm7740_vm15, %v8898_v27 }
 0x20a   : > { %6273 = vmatprep.mubr.msk.bf16.mxu1 %vm7752_vm0, %v8903_v46  ;;  %6302 = vmatpush3.bf16.msra.mxu1 %v6676_v7 }
 0x20b   : > { %6303 = vmatprep.subr.bf16.mxu1 %v6677_v57 }
 0x20e   : > { %6304 = vmatpush3.bf16.msra.mxu1 %v6677_v57 }
 0x211   : > { %6274 = vmatmul.mubr.msk.bf16.gmra.mrb[32].mxu1 %vm9007_vm12, %v8904_v9  ;;  %vm9024_vm12 = vnez %v8942_v21  ;;  %v9037_v21 = vld [vmem:[#allocation29_spill] sm:$0xff] }
 0x212   : > { %6277 = vmatprep.mubr.msk.bf16.mxu1 %vm9008_vm13, %v8909_v11  ;;  %vm9026_vm13 = vnez %v9025_v3  ;;  %v9036_v11 = vld [vmem:[#allocation59_spill] sm:$0xff]  ;;  %v9050_v3 = vld [vmem:[#allocation9_spill] sm:$0xff] }
 0x219   : > { %6278 = vmatmul.mubr.msk.bf16.gmra.mrb[36].mxu1 %vm9009_vm14, %v7394_v12  ;;  %v9017_v12 = vld [vmem:[#allocation27_spill] sm:$0xff] }
 0x21a   : > { %6281 = vmatprep.mubr.msk.bf16.mxu1 %vm9010_vm1, %v7416_v63  ;;  %vm9018_vm15 = vnez %v9017_v12  ;;  %v9019_v63 = vld [vmem:[#allocation33_spill] sm:$0xff]  ;;  %vm9030_vm1 = vnez %v9029_v32 }
 0x21b   : > { %vm9020_vm0 = vnez %v9019_v63  ;;  %v9048_v63 = vld [vmem:[#allocation28_spill] sm:$0xff] }
 0x221   : > { %6282 = vmatmul.mubr.msk.bf16.gmra.mrb[40].mxu1 %vm9012_vm3, %v7429_v58  ;;  %v9022_v58 = vld [vmem:[#allocation39_spill] sm:$0xff]  ;;  %vm9031_vm3 = vnez %v8957_v28  ;;  %v9038_v28 = vld [vmem:[#allocation54_spill] sm:$0xff] }
 0x222   : > { %6285 = vmatprep.mubr.msk.bf16.mxu1 %vm9014_vm6, %v7470_v18  ;;  %vm9023_vm11 = vnez %v9022_v58  ;;  %v9027_v18 = vld [vmem:[#allocation50_spill] sm:$0xff]  ;;  %vm9033_vm6 = vnez %v9032_v13 }
 0x223   : > { %vm9028_vm14 = vnez %v9027_v18  ;;  %v9056_v13 = vld [vmem:[#allocation10_spill] sm:$0xff] }
 0x229   : > { %6286 = vmatmul.mubr.msk.bf16.gmra.mrb[44].mxu1 %vm9018_vm15, %v5445_v22  ;;  %vm9039_vm15 = vnez %v9038_v28 }
 0x22a   : > { %6305 = vmatprep.mubr.msk.bf16.mxu1 %vm9020_vm0, %v8936_v16 }
 0x231   : > { %6306 = vmatmul.mubr.msk.bf16.vlgmr.msra.gmra.mrb[16].mxu1 %vm9021_vm4, %v7497_v30  ;;  %v8339_v30 = vld [vmem:[%s8708_s4] ss:$0 sm:$0xff] }
 0x232   : > { %6309 = vmatprep.mubr.msk.bf16.mxu1 %vm9023_vm11, %v7499_v48  ;;  %v841_v48 = vadd.f32 %v8339_v30, %v8135_v15  ;;  %v846_v37 = vadd.f32 %v8133_v61, %v8339_v30  ;;  %v861_v1 = vadd.f32 %v8339_v30, %v8160_v25  ;;  %v866_v9 = vadd.f32 %v8158_v2, %v8339_v30  ;;  %v9040_v2 = vld [vmem:[#allocation4_spill] sm:$0xff] }
 0x233   : > { %v856_v16 = vadd.f32 %v9036_v11, %v8339_v30  ;;  %v886_v53 = vadd.f32 %v9041_v35, %v8339_v30  ;;  %v876_v44 = vadd.f32 %v9044_v6, %v8339_v30  ;;  %v901_v57 = vadd.f32 %v8339_v30, %v8200_v26  ;;  %v9060_v11 = vld [vmem:[#allocation35_spill] sm:$0xff] }
 0x234   : > { %v891_v20 = vadd.f32 %v8339_v30, %v8192_v56  ;;  %v906_v39 = vadd.f32 %v9047_v60, %v8339_v30  ;;  %v896_v18 = vadd.f32 %v9050_v3, %v8339_v30  ;;  %v9068_v3 = vld [vmem:[#allocation42_spill] sm:$0xff] }
 0x239   : > { %6310 = vmatmul.mubr.msk.bf16.gmra.mrb[20].mxu1 %vm9024_vm12, %v7522_v4  ;;  %v831_v4 = vadd.f32 %v8339_v30, %v8128_v43 }
 0x23a   : > { %6313 = vmatprep.mubr.msk.bf16.mxu1 %vm9026_vm13, %v7545_v14 }
 0x241   : > { %6314 = vmatmul.mubr.msk.bf16.gmra.mrb[24].mxu1 %vm9028_vm14, %v7579_v45 }
 0x242   : > { %6317 = vmatprep.mubr.msk.bf16.mxu1 %vm9030_vm1, %v7588_v49  ;;  %v836_v49 = vadd.f32 %v8106_v34, %v8339_v30  ;;  %v881_v34 = vadd.f32 %v8339_v30, %v8182_v29 }
 0x249   : > { %6318 = vmatmul.mubr.msk.bf16.gmra.mrb[28].mxu1 %vm9031_vm3, %v7606_v55  ;;  %v851_v55 = vadd.f32 %v8339_v30, %v8155_v51 }
 0x24a   : > { %v6019_v14 = vpop.f32.mrb[48].mxu0  ;;  %6321 = vmatprep.mubr.msk.bf16.mxu1 %vm9033_vm6, %v7615_v24  ;;  %v9034_v24 = vld [vmem:[#allocation53_spill] sm:$0xff] }
 0x24b   : > { %v8347_v45 = vadd.f32 %v6019_v14, %v841_v48  ;;  %v2326_v33 = vpop.f32.mrb[49].mxu0  ;;  %vm9035_vm7 = vnez %v9034_v24  ;;  %v9051_v48 = vld [vmem:[#allocation17_spill] sm:$0xff] }
 0x24c   : > { %v8354_v47 = vadd.f32 %v2326_v33, %v831_v4  ;;  %v6020_v38 = vpop.f32.mrb[50].mxu0  ;;  %v9052_v4 = vld [vmem:[#allocation14_spill] sm:$0xff] }
 0x24d   : > { %v8359_v42 = vadd.f32 %v6020_v38, %v846_v37  ;;  %v2329_v27 = vpop.f32.mrb[51].mxu0  ;;  %v9053_v56 = vpack.c.bf16 %v9051_v48, %v9052_v4  ;;  %v9055_v38 = vld [vmem:[#allocation5_spill] sm:$0xff]  ;;  %v9069_v48 = vld [vmem:[#allocation43_spill] sm:$0xff] }
 0x24e   : > { %v8361_v52 = vadd.f32 %v2329_v27, %v836_v49  ;;  %v966_v4 = vadd.f32 %v9069_v48, %v8339_v30 }
 0x251   : > { %6322 = vmatmul.mubr.msk.bf16.gmra.mrb[32].mxu1 %vm9035_vm7, %v7635_v23  ;;  %v871_v23 = vadd.f32 %v8339_v30, %v9040_v2 }
 0x252   : > { %v6023_v46 = vpop.f32.mrb[52].mxu0  ;;  %6325 = vmatprep.mubr.msk.bf16.mxu1 %vm9039_vm15, %v9037_v21 }
 0x253   : > { %v8369_v0 = vadd.f32 %v6023_v46, %v861_v1  ;;  %v2342_v5 = vpop.f32.mrb[53].mxu0  ;;  %v9058_v1 = vld [vmem:[#allocation36_spill] sm:$0xff] }
 0x254   : > { %v8376_v41 = vadd.f32 %v2342_v5, %v851_v55  ;;  %v6024_v25 = vpop.f32.mrb[54].mxu0  ;;  %v921_v55 = vadd.f32 %v8339_v30, %v9058_v1 }
 0x255   : > { %v8381_v51 = vadd.f32 %v6024_v25, %v866_v9  ;;  %v2345_v15 = vpop.f32.mrb[55].mxu0  ;;  %v9059_v9 = vld [vmem:[#allocation31_spill] sm:$0xff] }
 0x256   : > { %v8383_v61 = vadd.f32 %v2345_v15, %v856_v16  ;;  %v911_v5 = vadd.f32 %v8339_v30, %v9059_v9  ;;  %v926_v16 = vadd.f32 %v9060_v11, %v8339_v30  ;;  %v9071_v9 = vld [vmem:[#allocation49_spill] sm:$0xff] }
 0x259   : > { %6326 = vmatmul.mubr.msk.bf16.gmra.mrb[36].mxu1 %vm8091_vm9, %v9042_v8  ;;  %vm9057_vm9 = vcmp.lt.s32.totalorder %v6986_v59, 7  ;;  %v9062_v59 = vld [vmem:[#allocation24_spill] sm:$0xff]  ;;  %v9064_v8 = vld [vmem:[#allocation38_spill] sm:$0xff] }
 0x25a   : > { %v6027_v43 = vpop.f32.mrb[56].mxu0  ;;  %6329 = vmatprep.mubr.msk.bf16.mxu1 %vm8096_vm2, %v9045_v36  ;;  %v3851_v27 = vsel %vm9057_vm9, %v9056_v13, %v9055_v38  ;;  %v916_v15 = vadd.f32 %v9062_v59, %v8339_v30  ;;  %v931_v50 = vadd.f32 %v8339_v30, %v9064_v8  ;;  %vm4866_vm2 = vcmask 64512  }
 0x25b   : > { %v8391_v40 = vadd.f32 %v6027_v43, %v881_v34  ;;  %v2358_v17 = vpop.f32.mrb[57].mxu0  ;;  %v5517_v46 = vpack.c.bf16 %v3851_v27, %v9056_v13 }
 0x25c   : > { %v8398_v54 = vadd.f32 %v2358_v17, %v871_v23  ;;  %v6028_v29 = vpop.f32.mrb[58].mxu0 }
 0x25d   : > { %v8403_v62 = vadd.f32 %v6028_v29, %v886_v53  ;;  %v2361_v10 = vpop.f32.mrb[59].mxu0  ;;  %v9063_v53 = vld [vmem:[#allocation41_spill] sm:$0xff] }
 0x25e   : > { %v8405_v7 = vadd.f32 %v2361_v10, %v876_v44  ;;  %v941_v17 = vadd.f32 %v8339_v30, %v9063_v53  ;;  %v9065_v44 = vld [vmem:[#allocation40_spill] sm:$0xff]  ;;  %v9066_v10 = vld [vmem:[#allocation37_spill] sm:$0xff] }
 0x25f   : > { %v946_v29 = vadd.f32 %v9065_v44, %v8339_v30 }
 0x261   : > { %6330 = vmatmul.mubr.msk.bf16.gmra.mrb[40].mxu1 %vm8116_vm10, %v9048_v63  ;;  %v9067_v63 = vld [vmem:[#allocation44_spill] sm:$0xff] }
 0x262   : > { %v6031_v31 = vpop.f32.mrb[60].mxu0  ;;  %6333 = vmatprep.mubr.msk.bf16.mxu1 %vm8121_vm8, %v9053_v56  ;;  %v961_v58 = vadd.f32 %v8339_v30, %v9067_v63 }
 0x263   : > { %v8413_v22 = vadd.f32 %v6031_v31, %v901_v57  ;;  %v2374_v12 = vpop.f32.mrb[61].mxu0  ;;  %v936_v57 = vadd.f32 %v9066_v10, %v8339_v30 }
 0x264   : > { %v8420_v32 = vadd.f32 %v2374_v12, %v891_v20  ;;  %v6032_v26 = vpop.f32.mrb[62].mxu0 }
 0x265   : > { %v8427_v37 = vadd.f32 %v6032_v26, %v906_v39  ;;  %v2377_v33 = vpop.f32.mrb[63].mxu0 }
 0x266   : > { %v8429_v49 = vadd.f32 %v2377_v33, %v896_v18  ;;  %v951_v18 = vadd.f32 %v8339_v30, %v9068_v3  ;;  %v9070_v33 = vld [vmem:[#allocation8_spill] sm:$0xff] }
 0x267   : > { %v956_v38 = vadd.f32 %v9070_v33, %v8339_v30 }
 0x269   : > { %6334 = vmatmul.mubr.msk.bf16.gmra.mrb[44].mxu1 %vm8146_vm5, %v5517_v46 }
 0x26a   : > { %v6035_v24 = vpop.f32.mrb[64].mxu0 }
 0x26b   : > { %v8442_v25 = vadd.f32 %v6035_v24, %v921_v55  ;;  %v2390_v21 = vpop.f32.mrb[65].mxu0  ;;  %v9072_v24 = vld [vmem:[#allocation47_spill] sm:$0xff] }
 0x26c   : > { %v8448_v34 = vadd.f32 %v2390_v21, %v911_v5  ;;  %v6036_v2 = vpop.f32.mrb[66].mxu0  ;;  %v981_v5 = vadd.f32 %v8339_v30, %v9071_v9  ;;  %v971_v11 = vadd.f32 %v8339_v30, %v9072_v24  ;;  %v9073_v21 = vld [vmem:[#allocation48_spill] sm:$0xff] }
 0x26d   : > { %v8450_v23 = vadd.f32 %v6036_v2, %v926_v16  ;;  %v2393_v43 = vpop.f32.mrb[67].mxu0  ;;  %v986_v28 = vadd.f32 %v9073_v21, %v8339_v30  ;;  %v9074_v2 = vld [vmem:[#allocation46_spill] sm:$0xff] }
 0x26e   : > { %v8452_v35 = vadd.f32 %v2393_v43, %v916_v15  ;;  %v976_v43 = vadd.f32 %v9074_v2, %v8339_v30 }
 0x272   : > { %v6039_v6 = vpop.f32.mrb[68].mxu0 }
 0x273   : > { %v8460_v36 = vadd.f32 %v6039_v6, %v941_v17  ;;  %v2406_v19 = vpop.f32.mrb[69].mxu0 }
 0x274   : > { %v8464_v20 = vadd.f32 %v2406_v19, %v931_v50  ;;  %v6040_v31 = vpop.f32.mrb[70].mxu0 }
 0x275   : > { %v8466_v60 = vadd.f32 %v6040_v31, %v946_v29  ;;  %v2409_v39 = vpop.f32.mrb[71].mxu0 }
 0x276   : > { %v8468_v12 = vadd.f32 %v2409_v39, %v936_v57 }
 0x27a   : > { %v6043_v26 = vpop.f32.mrb[72].mxu0 }
 0x27b   : > { %v8476_v56 = vadd.f32 %v6043_v26, %v961_v58  ;;  %v2422_v14 = vpop.f32.mrb[73].mxu0 }
 0x27c   : > { %v8480_v13 = vadd.f32 %v2422_v14, %v951_v18  ;;  %v6044_v27 = vpop.f32.mrb[74].mxu0 }
 0x27d   : > { %v8482_v1 = vadd.f32 %v6044_v27, %v966_v4  ;;  %v2425_v55 = vpop.f32.mrb[75].mxu0 }
 0x27e   : > { %v8484_v46 = vadd.f32 %v2425_v55, %v956_v38 }
 0x282   : > { %v6047_v16 = vpop.f32.mrb[76].mxu0 }
 0x283   : > { %v8492_v59 = vadd.f32 %v6047_v16, %v981_v5  ;;  %v2438_v15 = vpop.f32.mrb[77].mxu0 }
 0x284   : > { %v8496_v53 = vadd.f32 %v2438_v15, %v971_v11  ;;  %v6048_v17 = vpop.f32.mrb[78].mxu0 }
 0x285   : > { %v8498_v8 = vadd.f32 %v6048_v17, %v986_v28  ;;  %v2441_v50 = vpop.f32.mrb[79].mxu0 }
 0x286   : > { %v8500_v6 = vadd.f32 %v2441_v50, %v976_v43 }
 0x28a   : > { %v6067_v44 = vpop.f32.mrb[80].mxu0 }
 0x28b   : > { %v8503_v29 = vadd.f32 %v6067_v44, %v8347_v45  ;;  %v2953_v19 = vpop.f32.mrb[81].mxu0 }
 0x28c   : > { %v8506_v10 = vadd.f32 %v2953_v19, %v8354_v47  ;;  %v6068_v57 = vpop.f32.mrb[82].mxu0 }
 0x28d   : > { %v8509_v31 = vadd.f32 %v6068_v57, %v8359_v42  ;;  %v2956_v30 = vpop.f32.mrb[83].mxu0 }
 0x28e   : > { %v8512_v39 = vadd.f32 %v2956_v30, %v8361_v52 }
 0x292   : > { %v6071_v63 = vpop.f32.mrb[84].mxu0 }
 0x293   : > { %v8515_v58 = vadd.f32 %v6071_v63, %v8369_v0  ;;  %v2969_v3 = vpop.f32.mrb[85].mxu0 }
 0x294   : > { %v8518_v45 = vadd.f32 %v2969_v3, %v8376_v41  ;;  %v6072_v18 = vpop.f32.mrb[86].mxu0 }
 0x295   : > { %v8521_v47 = vadd.f32 %v6072_v18, %v8381_v51  ;;  %v2972_v26 = vpop.f32.mrb[87].mxu0 }
 0x296   : > { %v8524_v42 = vadd.f32 %v2972_v26, %v8383_v61 }
 0x29a   : > { %v6075_v48 = vpop.f32.mrb[88].mxu0 }
 0x29b   : > { %v8527_v52 = vadd.f32 %v6075_v48, %v8391_v40  ;;  %v2985_v4 = vpop.f32.mrb[89].mxu0 }
 0x29c   : > { %v8530_v0 = vadd.f32 %v2985_v4, %v8398_v54  ;;  %v6076_v14 = vpop.f32.mrb[90].mxu0 }
 0x29d   : > { %v8533_v41 = vadd.f32 %v6076_v14, %v8403_v62  ;;  %v2988_v33 = vpop.f32.mrb[91].mxu0 }
 0x29e   : > { %v8536_v51 = vadd.f32 %v2988_v33, %v8405_v7 }
 0x2a2   : > { %v6079_v38 = vpop.f32.mrb[92].mxu0 }
 0x2a3   : > { %v8539_v61 = vadd.f32 %v6079_v38, %v8413_v22  ;;  %v3001_v27 = vpop.f32.mrb[93].mxu0 }
 0x2a4   : > { %v8542_v40 = vadd.f32 %v3001_v27, %v8420_v32  ;;  %v6080_v55 = vpop.f32.mrb[94].mxu0 }
 0x2a5   : > { %v8545_v54 = vadd.f32 %v6080_v55, %v8427_v37  ;;  %v3004_v9 = vpop.f32.mrb[95].mxu0 }
 0x2a6   : > { %v8548_v62 = vadd.f32 %v3004_v9, %v8429_v49 }
 0x2aa   : > { %v6083_v5 = vpop.f32.mrb[96].mxu0 }
 0x2ab   : > { %v8551_v7 = vadd.f32 %v6083_v5, %v8442_v25  ;;  %v3017_v24 = vpop.f32.mrb[97].mxu0 }
 0x2ac   : > { %v8554_v22 = vadd.f32 %v3017_v24, %v8448_v34  ;;  %v6084_v11 = vpop.f32.mrb[98].mxu0 }
 0x2ad   : > { %v8557_v32 = vadd.f32 %v6084_v11, %v8450_v23  ;;  %v3020_v16 = vpop.f32.mrb[99].mxu0 }
 0x2ae   : > { %v8560_v37 = vadd.f32 %v3020_v16, %v8452_v35 }
 0x2b2   : > { %v6087_v21 = vpop.f32.mrb[100].mxu0 }
 0x2b3   : > { %v8563_v49 = vadd.f32 %v6087_v21, %v8460_v36  ;;  %v3033_v28 = vpop.f32.mrb[101].mxu0 }
 0x2b4   : > { %v8566_v25 = vadd.f32 %v3033_v28, %v8464_v20  ;;  %v6088_v15 = vpop.f32.mrb[102].mxu0 }
 0x2b5   : > { %v8569_v34 = vadd.f32 %v6088_v15, %v8466_v60  ;;  %v3036_v2 = vpop.f32.mrb[103].mxu0 }
 0x2b6   : > { %v8572_v23 = vadd.f32 %v3036_v2, %v8468_v12 }
 0x2ba   : > { %v6091_v43 = vpop.f32.mrb[104].mxu0 }
 0x2bb   : > { %v8575_v35 = vadd.f32 %v6091_v43, %v8476_v56  ;;  %v3049_v17 = vpop.f32.mrb[105].mxu0 }
 0x2bc   : > { %v8578_v36 = vadd.f32 %v3049_v17, %v8480_v13  ;;  %v6092_v50 = vpop.f32.mrb[106].mxu0 }
 0x2bd   : > { %v8581_v20 = vadd.f32 %v6092_v50, %v8482_v1  ;;  %v3052_v44 = vpop.f32.mrb[107].mxu0 }
 0x2be   : > { %v8584_v60 = vadd.f32 %v3052_v44, %v8484_v46 }
 0x2c2   : > { %v6095_v19 = vpop.f32.mrb[108].mxu0 }
 0x2c3   : > { %v8587_v12 = vadd.f32 %v6095_v19, %v8492_v59  ;;  %v3065_v57 = vpop.f32.mrb[109].mxu0 }
 0x2c4   : > { %v8590_v56 = vadd.f32 %v3065_v57, %v8496_v53  ;;  %v6096_v30 = vpop.f32.mrb[110].mxu0 }
 0x2c5   : > { %v8593_v13 = vadd.f32 %v6096_v30, %v8498_v8  ;;  %v3068_v63 = vpop.f32.mrb[111].mxu0 }
 0x2c6   : > { %v8596_v1 = vadd.f32 %v3068_v63, %v8500_v6 }
 0x304   : > { %v6307_v3 = vpop.f32.mrb[16].mxu1 }
 0x305   : > { %v6340_v46 = vadd.f32 %v8503_v29, %v6307_v3  ;;  %v4483_v18 = vpop.f32.mrb[17].mxu1 }
 0x306   : > { %v6342_v26 = vadd.f32 %v8506_v10, %v4483_v18  ;;  %v6308_v59 = vpop.f32.mrb[18].mxu1 }
 0x307   : > { %vm4772_vm8 = vcmp.gt.f32.partialorder %v6340_v46, 0.0  ;;  %v4804_v53 = vmul.f32 0.01, %v6340_v46  ;;  %v6344_v8 = vadd.f32 %v8509_v31, %v6308_v59  ;;  %v4486_v6 = vpop.f32.mrb[19].mxu1 }
 0x308   : > { %vm4770_vm10 = vcmp.gt.f32.partialorder %v6342_v26, 0.0  ;;  %v4802_v29 = vmul.f32 0.01, %v6342_v26  ;;  %v6346_v10 = vadd.f32 %v8512_v39, %v4486_v6 }
 0x309   : > { %v4836_v48 = vsel %vm4772_vm8, %v6340_v46, %v4804_v53  ;;  %vm4773_vm5 = vcmp.gt.f32.partialorder %v6344_v8, 0.0  ;;  %v4805_v4 = vmul.f32 0.01, %v6344_v8 }
 0x30a   : > { %4869 = vst.msk [vmem:[%s8605_s10 + $0x10] sm:$0xff] %vm4866_vm2, %v4836_v48  ;;  %v4834_v14 = vsel %vm4770_vm10, %v6342_v26, %v4802_v29  ;;  %vm4771_vm0 = vcmp.gt.f32.partialorder %v6346_v10, 0.0  ;;  %v4803_v33 = vmul.f32 0.01, %v6346_v10 }
 0x30b   : > { %4867 = vst.msk [vmem:[%s8605_s10] sm:$0xff] %vm4866_vm2, %v4834_v14  ;;  %v4837_v38 = vsel %vm4773_vm5, %v6344_v8, %v4805_v4 }
 0x30c   : > { %4870 = vst.msk [vmem:[%s8605_s10 + $0x18] sm:$0xff] %vm4866_vm2, %v4837_v38  ;;  %v4835_v31 = vsel %vm4771_vm0, %v6346_v10, %v4803_v33  ;;  %v6311_v27 = vpop.f32.mrb[20].mxu1 }
 0x30d   : > { %4868 = vst.msk [vmem:[%s8605_s10 + $0x8] sm:$0xff] %vm4866_vm2, %v4835_v31  ;;  %v6348_v39 = vadd.f32 %v8515_v58, %v6311_v27  ;;  %v4499_v55 = vpop.f32.mrb[21].mxu1 }
 0x30e   : > { %v6350_v9 = vadd.f32 %v8518_v45, %v4499_v55  ;;  %v6312_v5 = vpop.f32.mrb[22].mxu1 }
 0x30f   : > { %vm4776_vm4 = vcmp.gt.f32.partialorder %v6348_v39, 0.0  ;;  %v4808_v24 = vmul.f32 0.01, %v6348_v39  ;;  %v6352_v11 = vadd.f32 %v8521_v47, %v6312_v5  ;;  %v4502_v16 = vpop.f32.mrb[23].mxu1 }
 0x310   : > { %vm4774_vm11 = vcmp.gt.f32.partialorder %v6350_v9, 0.0  ;;  %v4806_v21 = vmul.f32 0.01, %v6350_v9  ;;  %v6354_v28 = vadd.f32 %v8524_v42, %v4502_v16 }
 0x311   : > { %v4840_v15 = vsel %vm4776_vm4, %v6348_v39, %v4808_v24  ;;  %vm4777_vm12 = vcmp.gt.f32.partialorder %v6352_v11, 0.0  ;;  %v4809_v2 = vmul.f32 0.01, %v6352_v11 }
 0x312   : > { %4873 = vst.msk [vmem:[%s8605_s10 + $0x30] sm:$0xff] %vm4866_vm2, %v4840_v15  ;;  %v4838_v58 = vsel %vm4774_vm11, %v6350_v9, %v4806_v21  ;;  %vm4775_vm13 = vcmp.gt.f32.partialorder %v6354_v28, 0.0  ;;  %v4807_v45 = vmul.f32 0.01, %v6354_v28 }
 0x313   : > { %4871 = vst.msk [vmem:[%s8605_s10 + $0x20] sm:$0xff] %vm4866_vm2, %v4838_v58  ;;  %v4841_v43 = vsel %vm4777_vm12, %v6352_v11, %v4809_v2 }
 0x314   : > { %4874 = vst.msk [vmem:[%s8605_s10 + $0x38] sm:$0xff] %vm4866_vm2, %v4841_v43  ;;  %v4839_v47 = vsel %vm4775_vm13, %v6354_v28, %v4807_v45  ;;  %v6315_v17 = vpop.f32.mrb[24].mxu1 }
 0x315   : > { %4872 = vst.msk [vmem:[%s8605_s10 + $0x28] sm:$0xff] %vm4866_vm2, %v4839_v47  ;;  %v6356_v42 = vadd.f32 %v8527_v52, %v6315_v17  ;;  %v4515_v50 = vpop.f32.mrb[25].mxu1 }
 0x316   : > { %v6358_v44 = vadd.f32 %v8530_v0, %v4515_v50  ;;  %v6316_v19 = vpop.f32.mrb[26].mxu1 }
 0x317   : > { %vm4780_vm14 = vcmp.gt.f32.partialorder %v6356_v42, 0.0  ;;  %v4812_v57 = vmul.f32 0.01, %v6356_v42  ;;  %v6360_v30 = vadd.f32 %v8533_v41, %v6316_v19  ;;  %v4518_v63 = vpop.f32.mrb[27].mxu1 }
 0x318   : > { %vm4778_vm1 = vcmp.gt.f32.partialorder %v6358_v44, 0.0  ;;  %v4810_v3 = vmul.f32 0.01, %v6358_v44  ;;  %v6362_v46 = vadd.f32 %v8536_v51, %v4518_v63 }
 0x319   : > { %v4844_v18 = vsel %vm4780_vm14, %v6356_v42, %v4812_v57  ;;  %vm4781_vm3 = vcmp.gt.f32.partialorder %v6360_v30, 0.0  ;;  %v4813_v26 = vmul.f32 0.01, %v6360_v30 }
 0x31a   : > { %4877 = vst.msk [vmem:[%s8605_s10 + $0x50] sm:$0xff] %vm4866_vm2, %v4844_v18  ;;  %v4842_v52 = vsel %vm4778_vm1, %v6358_v44, %v4810_v3  ;;  %vm4779_vm6 = vcmp.gt.f32.partialorder %v6362_v46, 0.0  ;;  %v4811_v0 = vmul.f32 0.01, %v6362_v46 }
 0x31b   : > { %4875 = vst.msk [vmem:[%s8605_s10 + $0x40] sm:$0xff] %vm4866_vm2, %v4842_v52  ;;  %v4845_v59 = vsel %vm4781_vm3, %v6360_v30, %v4813_v26 }
 0x31c   : > { %4878 = vst.msk [vmem:[%s8605_s10 + $0x58] sm:$0xff] %vm4866_vm2, %v4845_v59  ;;  %v4843_v41 = vsel %vm4779_vm6, %v6362_v46, %v4811_v0  ;;  %v6319_v53 = vpop.f32.mrb[28].mxu1 }
 0x31d   : > { %4876 = vst.msk [vmem:[%s8605_s10 + $0x48] sm:$0xff] %vm4866_vm2, %v4843_v41  ;;  %v6364_v51 = vadd.f32 %v8539_v61, %v6319_v53  ;;  %v4531_v8 = vpop.f32.mrb[29].mxu1 }
 0x31e   : > { %v6366_v6 = vadd.f32 %v8542_v40, %v4531_v8  ;;  %v6320_v29 = vpop.f32.mrb[30].mxu1 }
 0x31f   : > { %vm4784_vm7 = vcmp.gt.f32.partialorder %v6364_v51, 0.0  ;;  %v4816_v10 = vmul.f32 0.01, %v6364_v51  ;;  %v6368_v48 = vadd.f32 %v8545_v54, %v6320_v29  ;;  %v4534_v4 = vpop.f32.mrb[31].mxu1 }
 0x320   : > { %vm4782_vm15 = vcmp.gt.f32.partialorder %v6366_v6, 0.0  ;;  %v4814_v14 = vmul.f32 0.01, %v6366_v6  ;;  %v6370_v33 = vadd.f32 %v8548_v62, %v4534_v4 }
 0x321   : > { %v4848_v38 = vsel %vm4784_vm7, %v6364_v51, %v4816_v10  ;;  %vm4785_vm9 = vcmp.gt.f32.partialorder %v6368_v48, 0.0  ;;  %v4817_v31 = vmul.f32 0.01, %v6368_v48 }
 0x322   : > { %4881 = vst.msk [vmem:[%s8605_s10 + $0x70] sm:$0xff] %vm4866_vm2, %v4848_v38  ;;  %v4846_v61 = vsel %vm4782_vm15, %v6366_v6, %v4814_v14  ;;  %vm4783_vm8 = vcmp.gt.f32.partialorder %v6370_v33, 0.0  ;;  %v4815_v40 = vmul.f32 0.01, %v6370_v33 }
 0x323   : > { %4879 = vst.msk [vmem:[%s8605_s10 + $0x60] sm:$0xff] %vm4866_vm2, %v4846_v61  ;;  %v4849_v27 = vsel %vm4785_vm9, %v6368_v48, %v4817_v31 }
 0x324   : > { %4882 = vst.msk [vmem:[%s8605_s10 + $0x78] sm:$0xff] %vm4866_vm2, %v4849_v27  ;;  %v4847_v54 = vsel %vm4783_vm8, %v6370_v33, %v4815_v40  ;;  %v6323_v39 = vpop.f32.mrb[32].mxu1 }
 0x325   : > { %4880 = vst.msk [vmem:[%s8605_s10 + $0x68] sm:$0xff] %vm4866_vm2, %v4847_v54  ;;  %v6372_v62 = vadd.f32 %v8551_v7, %v6323_v39  ;;  %v4547_v55 = vpop.f32.mrb[33].mxu1 }
 0x326   : > { %v6374_v9 = vadd.f32 %v8554_v22, %v4547_v55  ;;  %v6324_v5 = vpop.f32.mrb[34].mxu1 }
 0x327   : > { %vm4788_vm10 = vcmp.gt.f32.partialorder %v6372_v62, 0.0  ;;  %v4820_v24 = vmul.f32 0.01, %v6372_v62  ;;  %v6376_v11 = vadd.f32 %v8557_v32, %v6324_v5  ;;  %v4550_v16 = vpop.f32.mrb[35].mxu1 }
 0x328   : > { %vm4786_vm5 = vcmp.gt.f32.partialorder %v6374_v9, 0.0  ;;  %v4818_v21 = vmul.f32 0.01, %v6374_v9  ;;  %v6378_v28 = vadd.f32 %v8560_v37, %v4550_v16 }
 0x329   : > { %v4852_v15 = vsel %vm4788_vm10, %v6372_v62, %v4820_v24  ;;  %vm4789_vm0 = vcmp.gt.f32.partialorder %v6376_v11, 0.0  ;;  %v4821_v2 = vmul.f32 0.01, %v6376_v11 }
 0x32a   : > { %4885 = vst.msk [vmem:[%s8605_s10 + $0x90] sm:$0xff] %vm4866_vm2, %v4852_v15  ;;  %v4850_v7 = vsel %vm4786_vm5, %v6374_v9, %v4818_v21  ;;  %vm4787_vm4 = vcmp.gt.f32.partialorder %v6378_v28, 0.0  ;;  %v4819_v22 = vmul.f32 0.01, %v6378_v28 }
 0x32b   : > { %4883 = vst.msk [vmem:[%s8605_s10 + $0x80] sm:$0xff] %vm4866_vm2, %v4850_v7  ;;  %v4853_v58 = vsel %vm4789_vm0, %v6376_v11, %v4821_v2 }
 0x32c   : > { %4886 = vst.msk [vmem:[%s8605_s10 + $0x98] sm:$0xff] %vm4866_vm2, %v4853_v58  ;;  %v4851_v32 = vsel %vm4787_vm4, %v6378_v28, %v4819_v22  ;;  %v6327_v45 = vpop.f32.mrb[36].mxu1 }
 0x32d   : > { %4884 = vst.msk [vmem:[%s8605_s10 + $0x88] sm:$0xff] %vm4866_vm2, %v4851_v32  ;;  %v6380_v37 = vadd.f32 %v8563_v49, %v6327_v45  ;;  %v4563_v43 = vpop.f32.mrb[37].mxu1 }
 0x32e   : > { %v6382_v47 = vadd.f32 %v8566_v25, %v4563_v43  ;;  %v6328_v17 = vpop.f32.mrb[38].mxu1 }
 0x32f   : > { %vm4792_vm11 = vcmp.gt.f32.partialorder %v6380_v37, 0.0  ;;  %v4824_v42 = vmul.f32 0.01, %v6380_v37  ;;  %v6384_v50 = vadd.f32 %v8569_v34, %v6328_v17  ;;  %v4566_v44 = vpop.f32.mrb[39].mxu1 }
 0x330   : > { %vm4790_vm12 = vcmp.gt.f32.partialorder %v6382_v47, 0.0  ;;  %v4822_v19 = vmul.f32 0.01, %v6382_v47  ;;  %v6386_v57 = vadd.f32 %v8572_v23, %v4566_v44 }
 0x331   : > { %v4856_v30 = vsel %vm4792_vm11, %v6380_v37, %v4824_v42  ;;  %vm4793_vm13 = vcmp.gt.f32.partialorder %v6384_v50, 0.0  ;;  %v4825_v63 = vmul.f32 0.01, %v6384_v50 }
 0x332   : > { %4889 = vst.msk [vmem:[%s8605_s10 + $0xb0] sm:$0xff] %vm4866_vm2, %v4856_v30  ;;  %v4854_v49 = vsel %vm4790_vm12, %v6382_v47, %v4822_v19  ;;  %vm4791_vm14 = vcmp.gt.f32.partialorder %v6386_v57, 0.0  ;;  %v4823_v25 = vmul.f32 0.01, %v6386_v57 }
 0x333   : > { %4887 = vst.msk [vmem:[%s8605_s10 + $0xa0] sm:$0xff] %vm4866_vm2, %v4854_v49  ;;  %v4857_v3 = vsel %vm4793_vm13, %v6384_v50, %v4825_v63 }
 0x334   : > { %4890 = vst.msk [vmem:[%s8605_s10 + $0xb8] sm:$0xff] %vm4866_vm2, %v4857_v3  ;;  %v4855_v34 = vsel %vm4791_vm14, %v6386_v57, %v4823_v25  ;;  %v6331_v46 = vpop.f32.mrb[40].mxu1 }
 0x335   : > { %4888 = vst.msk [vmem:[%s8605_s10 + $0xa8] sm:$0xff] %vm4866_vm2, %v4855_v34  ;;  %v6388_v23 = vadd.f32 %v8575_v35, %v6331_v46  ;;  %v4579_v18 = vpop.f32.mrb[41].mxu1 }
 0x336   : > { %v6390_v26 = vadd.f32 %v8578_v36, %v4579_v18  ;;  %v6332_v52 = vpop.f32.mrb[42].mxu1 }
 0x337   : > { %vm4796_vm1 = vcmp.gt.f32.partialorder %v6388_v23, 0.0  ;;  %v4828_v0 = vmul.f32 0.01, %v6388_v23  ;;  %v6392_v59 = vadd.f32 %v8581_v20, %v6332_v52  ;;  %v4582_v41 = vpop.f32.mrb[43].mxu1 }
 0x338   : > { %vm4794_vm3 = vcmp.gt.f32.partialorder %v6390_v26, 0.0  ;;  %v4826_v53 = vmul.f32 0.01, %v6390_v26  ;;  %v6394_v51 = vadd.f32 %v8584_v60, %v4582_v41 }
 0x339   : > { %v4860_v8 = vsel %vm4796_vm1, %v6388_v23, %v4828_v0  ;;  %vm4797_vm6 = vcmp.gt.f32.partialorder %v6392_v59, 0.0  ;;  %v4829_v6 = vmul.f32 0.01, %v6392_v59 }
 0x33a   : > { %4893 = vst.msk [vmem:[%s8605_s10 + $0xd0] sm:$0xff] %vm4866_vm2, %v4860_v8  ;;  %v4858_v35 = vsel %vm4794_vm3, %v6390_v26, %v4826_v53  ;;  %vm4795_vm7 = vcmp.gt.f32.partialorder %v6394_v51, 0.0  ;;  %v4827_v36 = vmul.f32 0.01, %v6394_v51 }
 0x33b   : > { %4891 = vst.msk [vmem:[%s8605_s10 + $0xc0] sm:$0xff] %vm4866_vm2, %v4858_v35  ;;  %v4861_v29 = vsel %vm4797_vm6, %v6392_v59, %v4829_v6 }
 0x33c   : > { %4894 = vst.msk [vmem:[%s8605_s10 + $0xd8] sm:$0xff] %vm4866_vm2, %v4861_v29  ;;  %v4859_v20 = vsel %vm4795_vm7, %v6394_v51, %v4827_v36  ;;  %v6335_v10 = vpop.f32.mrb[44].mxu1 }
 0x33d   : > { %4892 = vst.msk [vmem:[%s8605_s10 + $0xc8] sm:$0xff] %vm4866_vm2, %v4859_v20  ;;  %v6396_v60 = vadd.f32 %v8587_v12, %v6335_v10  ;;  %v4595_v48 = vpop.f32.mrb[45].mxu1 }
 0x33e   : > { %v6398_v4 = vadd.f32 %v8590_v56, %v4595_v48  ;;  %v6336_v14 = vpop.f32.mrb[46].mxu1 }
 0x33f   : > { %vm4800_vm15 = vcmp.gt.f32.partialorder %v6396_v60, 0.0  ;;  %v4832_v33 = vmul.f32 0.01, %v6396_v60  ;;  %v6400_v38 = vadd.f32 %v8593_v13, %v6336_v14  ;;  %v4598_v31 = vpop.f32.mrb[47].mxu1 }
 0x340   : > { %vm4798_vm9 = vcmp.gt.f32.partialorder %v6398_v4, 0.0  ;;  %v4830_v61 = vmul.f32 0.01, %v6398_v4  ;;  %v6402_v40 = vadd.f32 %v8596_v1, %v4598_v31 }
 0x341   : > { %v4864_v27 = vsel %vm4800_vm15, %v6396_v60, %v4832_v33  ;;  %vm4801_vm8 = vcmp.gt.f32.partialorder %v6400_v38, 0.0  ;;  %v4833_v54 = vmul.f32 0.01, %v6400_v38 }
 0x342   : > { %4897 = vst.msk [vmem:[%s8605_s10 + $0xf0] sm:$0xff] %vm4866_vm2, %v4864_v27  ;;  %v4862_v12 = vsel %vm4798_vm9, %v6398_v4, %v4830_v61  ;;  %vm4799_vm10 = vcmp.gt.f32.partialorder %v6402_v40, 0.0  ;;  %v4831_v56 = vmul.f32 0.01, %v6402_v40 }
 0x343   : > { %4895 = vst.msk [vmem:[%s8605_s10 + $0xe0] sm:$0xff] %vm4866_vm2, %v4862_v12  ;;  %v4865_v39 = vsel %vm4801_vm8, %v6400_v38, %v4833_v54 }
 0x344   : > { %4898 = vst.msk [vmem:[%s8605_s10 + $0xf8] sm:$0xff] %vm4866_vm2, %v4865_v39  ;;  %v4863_v13 = vsel %vm4799_vm10, %v6402_v40, %v4831_v56 }
 0x345   : > { %4896 = vst.msk [vmem:[%s8605_s10 + $0xe8] sm:$0xff] %vm4866_vm2, %v4863_v13 }
 0x346 PF: > { %s16_s21 = sadd.s32 1, %s6684_s21  }
 0x347   : > { %p13_p4 = scmp.ge.s32.totalorder %s16_s21, 4  }
 0x349   :  { %15 = sbr.rel (!%p13_p4) target bundleno = 1 (0x1), region = 85 }

</bundles_post_ra>
